<compile_context>
chip_gen: v6e
topology: v6e:2x2x1
jax: 0.10.0
libtpu: 0.0.40
codegen_flags: <defaults>
</compile_context>

<pallas_src>
import math
import numpy as np
import jax
import jax.numpy as jnp
from jax import lax
from jax.experimental import pallas as pl
from jax.experimental.pallas import tpu as pltpu


CFG = dict(in_chs=8, out_chs=16, w_dim=32, resolution=16, kernel_size=3,
           scale_factor=2, conv_clamp=256.0, eps=1e-8)
# TODO(synk): fp16_res autocast and impl='cuda'/'ref' dispatch are host-side
# control flow in the original module; this implementation runs the fp32 path
# (bf16 MXU inputs, f32 accumulation / outputs).

_IN_RES = CFG["resolution"] // CFG["scale_factor"]   # 8
_RES = CFG["resolution"]                             # 16
_KS = CFG["kernel_size"]                             # 3
_UP = CFG["scale_factor"]                            # 2

# Normalized blur filter (upfirdn2d.setup_filter([1, 3, 3, 1])).
_F1D = np.array([1.0, 3.0, 3.0, 1.0], np.float64)
_F2D = np.outer(_F1D, _F1D)
_F2D = (_F2D / _F2D.sum()).astype(np.float32)        # (4, 4), sums to 1


# ----------------------------------------------------------------------------
# Static tap tables (3x3 "same" conv on a flattened row-major grid)
# ----------------------------------------------------------------------------
def _build_taps(side):
    """Masks + lane offsets for a 3x3 same-padding conv on a (side x side) grid
    flattened row-major into M = side*side lanes, with the flat row zero-padded
    by (side+1) on each end so every shifted slice stays in bounds."""
    m = side * side
    pad = side + 1
    yo, xo = np.divmod(np.arange(m), side)
    masks = np.zeros((9, m), np.float32)
    offs = []
    t = 0
    for dy in (-1, 0, 1):
        for dx in (-1, 0, 1):
            ok = ((yo + dy >= 0) & (yo + dy < side) &
                  (xo + dx >= 0) & (xo + dx < side))
            masks[t] = ok.astype(np.float32)
            offs.append(pad + dy * side + dx)
            t += 1
    unmasked = tuple(int(t) for t in range(9) if masks[t].all())
    return masks, tuple(offs), pad, unmasked


MASK0_NP, OFFS0, PAD0, UNMASKED0 = _build_taps(_IN_RES)   # conv0 taps (8x8 input)
MASK1_NP, OFFS1, PAD1, UNMASKED1 = _build_taps(_RES)      # conv1 taps (16x16 input)


def _build_phase_filter(f2d, ks, up):
    """Polyphase fold of (conv_transpose stride `up`, k x k kernel) followed by
    the upfirdn blur (filter f2d, pad 1, gain up**2) into up*up phase filters:
        Kphase[p, dy, dx, oc, ic] = sum_{i,j} w[oc, ic, i, j] * F4[p, dy, dx, i, j]
    Each phase is then an ordinary 3x3 same-conv at the *input* resolution."""
    fh, fw = f2d.shape
    out = np.zeros((up * up, 3, 3, ks, ks), np.float32)
    for py in range(up):
        for px in range(up):
            p = py * up + px
            for dyi in range(3):
                for dxi in range(3):
                    for i in range(ks):
                        u = 2 * (dyi - 1) + i + 1 - py
                        if not (0 <= u < fh):
                            continue
                        for j in range(ks):
                            v = 2 * (dxi - 1) + j + 1 - px
                            if not (0 <= v < fw):
                                continue
                            out[p, dyi, dxi, i, j] = (up * up) * f2d[u, v]
    return out
# TODO(synk): the upsampling-conv padding convention follows the StyleGAN2-ADA
# conv2d_resample path (transpose-conv pad 0, blur pad (1,1,1,1), gain up**2);
# the hammer ModulateConvLayer filter_padding is believed identical but is not
# reproduced verbatim here.


PHASE_FILTER_NP = _build_phase_filter(_F2D, _KS, _UP)   # (4, 3, 3, 3, 3)


# ----------------------------------------------------------------------------
# Pallas kernels
# ----------------------------------------------------------------------------
def _stacked_taps_bf16(xx, mm, offsets, unmasked, m):
    """Build the (9*C_in, M) VMEM im2col slab: static lane slices, edge masks
    applied per-tap (skipped where the mask is statically all-ones), single
    bf16 cast at the end.  All pieces are 8-row-aligned f32 so the sublane
    concat is layout-clean."""
    taps = []
    for t, off in enumerate(offsets):
        xt = xx[:, off:off + m]
        if t not in unmasked:
            xt = xt * mm[t:t + 1, :]
        taps.append(xt)
    return jnp.concatenate(taps, axis=0).astype(jnp.bfloat16)


def _make_tap_conv_kernel(offsets, unmasked, clamp):
    """conv0: acc = Wstk @ im2col(x); out = clamp(lrelu(acc + nb)).
    Style, demod coefficient and the sqrt(2) act-gain are pre-folded into Wstk
    and nb."""
    def kernel(x_ref, w_ref, m_ref, nb_ref, o_ref):
        xx = x_ref[0]                       # (C_in, M + 2*pad) f32
        ww = w_ref[0]                       # (C_out_total, 9*C_in) bf16
        mm = m_ref[...]                     # (9, M) f32
        nb = nb_ref[...]                    # (C_out_total, M) f32
        rows, m = nb.shape
        xs = _stacked_taps_bf16(xx, mm, offsets, unmasked, m)   # (9*C_in, M)
        z = jnp.dot(ww, xs, preferred_element_type=jnp.float32) + nb
        z = jnp.maximum(z, 0.2 * z)                             # lrelu (gain folded)
        o_ref[0] = jnp.clip(z, -clamp, clamp)
    return kernel


def _make_conv1_torgb_kernel(offsets, unmasked, clamp):
    """conv1 (3x3 modulated conv) fused with torgb (1x1 modulated conv) and the
    rgb-skip add.  Emits both the block activation x1 and the rgb image."""
    def kernel(x_ref, w1_ref, m_ref, nb_ref, w2_ref, b2_ref, up_ref,
               x_out_ref, rgb_out_ref):
        xx = x_ref[0]                       # (OC, M + 2*pad) f32
        ww = w1_ref[0]                      # (OC, 9*OC) bf16
        mm = m_ref[...]                     # (9, M) f32
        nb = nb_ref[...]                    # (OC, M) f32
        rows, m = nb.shape
        xs = _stacked_taps_bf16(xx, mm, offsets, unmasked, m)   # (9*OC, M)
        z = jnp.dot(ww, xs, preferred_element_type=jnp.float32) + nb
        z = jnp.maximum(z, 0.2 * z)
        x1 = jnp.clip(z, -clamp, clamp)     # (OC, M) f32, lane-dense
        x_out_ref[0] = x1
        # torgb: 1x1 conv folded to (3, OC) per-sample weight; linear act + clamp.
        y = jnp.dot(w2_ref[0], x1, preferred_element_type=jnp.float32) + b2_ref[...]
        y = jnp.clip(y, -clamp, clamp)
        rgb_out_ref[0] = y + up_ref[0]      # add upsampled rgb skip
    return kernel


# ----------------------------------------------------------------------------
# XLA glue: tiny per-sample reductions, weight folding, rgb-skip upsample
# ----------------------------------------------------------------------------
def _affine_style(wcode, w_sty, b_sty, w_dim):
    # DenseLayer(use_wscale=True, wscale_gain=1, lr_mul=1, linear): runtime
    # weight scale 1/sqrt(fan_in), bias initialized to 1.
    return wcode @ (w_sty * (1.0 / math.sqrt(w_dim))).T + b_sty


def _demod_coef(w, style, eps):
    # decoef[n, oc] = rsqrt(sum_{ic,kh,kw} (w * style)^2 + eps)
    # Note: the reference's runtime wscale / inf-norm pre-normalization of the
    # conv weight cancels exactly against the demodulation coefficient
    # (demodulate=True for all three layers), so it is omitted here.
    ww = w[None] * style[:, None, :, None, None]
    return lax.rsqrt(jnp.sum(ww * ww, axis=(2, 3, 4)) + eps)


def _upsample2d_rgb(rgb, f2d):
    """upfirdn2d.upsample2d(rgb, f): up=2, pad (2,1,2,1), gain=4 (depthwise).
    Kept in XLA (tiny; lane width 1 in Pallas would be masked stores)."""
    c = rgb.shape[1]
    fk = jnp.tile((f2d * 4.0)[None, None], (c, 1, 1, 1))
    return lax.conv_general_dilated(
        rgb, fk, (1, 1), ((2, 2), (2, 2)), lhs_dilation=(2, 2),
        dimension_numbers=("NCHW", "OIHW", "NCHW"), feature_group_count=c)


# ----------------------------------------------------------------------------
# SynthesisBlock forward (Pallas path)
# ----------------------------------------------------------------------------
@jax.jit
def synthesis_block_forward(params, x, rgb, wp):
    c = CFG
    N = x.shape[0]
    ic, oc = c["in_chs"], c["out_chs"]
    h, r = _IN_RES, _RES
    g = math.sqrt(2.0)
    clamp = c["conv_clamp"]
    eps = c["eps"]
    f2d = params["filter"]

    # --- tiny per-sample reductions (XLA glue) --------------------------------
    s0 = _affine_style(wp[:, 0], params["sty0_w"], params["sty0_b"], c["w_dim"])
    s1 = _affine_style(wp[:, 1], params["sty1_w"], params["sty1_b"], c["w_dim"])
    s2 = _affine_style(wp[:, 2], params["sty2_w"], params["sty2_b"], c["w_dim"])
    d0 = _demod_coef(params["w0"], s0, eps)
    d1 = _demod_coef(params["w1"], s1, eps)
    d2 = _demod_coef(params["w2"], s2, eps)

    # --- conv0: 4-phase upsampling modulated conv -----------------------------
    # Fold transpose-conv + blur into 4 phase kernels, then fold style / demod /
    # act-gain into per-sample STACKED tap weights of shape (N, 4*OC, 9*IC).
    kp = jnp.einsum("oiab,pyxab->pyxoi", params["w0"], jnp.asarray(PHASE_FILTER_NP))
    kp = jnp.transpose(kp, (1, 2, 0, 3, 4)).reshape(9, 4 * oc, ic)   # rows = p*OC + oc
    d0g = jnp.tile(d0 * g, (1, 4))                                   # (N, 4*OC)
    w0eff = kp[None] * s0[:, None, None, :] * d0g[:, None, :, None]  # (N, 9, 4*OC, IC)
    w0stk = (jnp.transpose(w0eff, (0, 2, 1, 3))
             .reshape(N, 4 * oc, 9 * ic).astype(jnp.bfloat16))       # (N, 4*OC, 9*IC)

    # noise*strength*gain + bias*gain, prefolded, phase-major rows.
    noise_ph = params["noise0"].reshape(h, 2, h, 2).transpose(1, 3, 0, 2).reshape(4, h * h)
    nb0 = ((noise_ph * (params["ns0"] * g))[:, None, :]
           + (params["b0"] * g)[None, :, None]).reshape(4 * oc, h * h)

    x_pad = jnp.pad(x.reshape(N, ic, h * h), ((0, 0), (0, 0), (PAD0, PAD0)))
    mask0 = jnp.asarray(MASK0_NP)

    out0 = pl.pallas_call(
        _make_tap_conv_kernel(OFFS0, UNMASKED0, clamp),
        out_shape=jax.ShapeDtypeStruct((N, 4 * oc, h * h), jnp.float32),
        grid=(N,),
        in_specs=[
            pl.BlockSpec((1, ic, h * h + 2 * PAD0), lambda i: (i, 0, 0)),
            pl.BlockSpec((1, 4 * oc, 9 * ic), lambda i: (i, 0, 0)),
            pl.BlockSpec((9, h * h), lambda i: (0, 0)),
            pl.BlockSpec((4 * oc, h * h), lambda i: (0, 0)),
        ],
        out_specs=pl.BlockSpec((1, 4 * oc, h * h), lambda i: (i, 0, 0)),
        compiler_params=pltpu.CompilerParams(dimension_semantics=("parallel",)),
    )(x_pad, w0stk, mask0, nb0)                                      # (N, 4*OC, 64)

    # Un-phase: rows (py, px, oc), cols (yo, xo) -> row-major (N, OC, 16*16).
    x0 = (out0.reshape(N, 2, 2, oc, h, h)
          .transpose(0, 3, 4, 1, 5, 2)
          .reshape(N, oc, r * r))

    # --- conv1 + torgb + rgb-skip: one fused kernel ----------------------------
    w1t = jnp.transpose(params["w1"].reshape(oc, oc, 9), (2, 0, 1))  # (9, OC, OC)
    w1eff = w1t[None] * s1[:, None, None, :] * (d1 * g)[:, None, :, None]
    w1stk = (jnp.transpose(w1eff, (0, 2, 1, 3))
             .reshape(N, oc, 9 * oc).astype(jnp.bfloat16))           # (N, OC, 9*OC)
    nb1 = (params["noise1"].reshape(1, r * r) * (params["ns1"] * g)
           + (params["b1"] * g)[:, None])                            # (OC, 256)
    w2eff = (params["w2"][:, :, 0, 0][None] * s2[:, None, :] * d2[:, :, None]
             ).astype(jnp.float32)                                   # (N, 3, OC)
    b2c = params["b2"].reshape(3, 1)

    x0_pad = jnp.pad(x0, ((0, 0), (0, 0), (PAD1, PAD1)))
    mask1 = jnp.asarray(MASK1_NP)

    rgb_up = _upsample2d_rgb(rgb, f2d).reshape(N, 3, r * r)

    x1_flat, rgb_flat = pl.pallas_call(
        _make_conv1_torgb_kernel(OFFS1, UNMASKED1, clamp),
        out_shape=(jax.ShapeDtypeStruct((N, oc, r * r), jnp.float32),
                   jax.ShapeDtypeStruct((N, 3, r * r), jnp.float32)),
        grid=(N,),
        in_specs=[
            pl.BlockSpec((1, oc, r * r + 2 * PAD1), lambda i: (i, 0, 0)),
            pl.BlockSpec((1, oc, 9 * oc), lambda i: (i, 0, 0)),
            pl.BlockSpec((9, r * r), lambda i: (0, 0)),
            pl.BlockSpec((oc, r * r), lambda i: (0, 0)),
            pl.BlockSpec((1, 3, oc), lambda i: (i, 0, 0)),
            pl.BlockSpec((3, 1), lambda i: (0, 0)),
            pl.BlockSpec((1, 3, r * r), lambda i: (i, 0, 0)),
        ],
        out_specs=(pl.BlockSpec((1, oc, r * r), lambda i: (i, 0, 0)),
                   pl.BlockSpec((1, 3, r * r), lambda i: (i, 0, 0))),
        compiler_params=pltpu.CompilerParams(dimension_semantics=("parallel",)),
    )(x0_pad, w1stk, mask1, nb1, w2eff, b2c, rgb_up)

    return x1_flat.reshape(N, oc, r, r), rgb_flat.reshape(N, 3, r, r)


# ----------------------------------------------------------------------------
# Pure-JAX reference (f32, lax convs) for numeric validation
# ----------------------------------------------------------------------------
@jax.jit
def reference_forward(params, x, rgb, wp):
    c = CFG
    oc = c["out_chs"]
    g = math.sqrt(2.0)
    clamp = c["conv_clamp"]
    eps = c["eps"]
    f2d = params["filter"]
    dn = ("NCHW", "OIHW", "NCHW")

    s0 = _affine_style(wp[:, 0], params["sty0_w"], params["sty0_b"], c["w_dim"])
    s1 = _affine_style(wp[:, 1], params["sty1_w"], params["sty1_b"], c["w_dim"])
    s2 = _affine_style(wp[:, 2], params["sty2_w"], params["sty2_b"], c["w_dim"])
    d0 = _demod_coef(params["w0"], s0, eps)
    d1 = _demod_coef(params["w1"], s1, eps)
    d2 = _demod_coef(params["w2"], s2, eps)

    # conv0: modulate -> conv_transpose(stride 2) -> blur(gain 4) -> demod ->
    #        noise -> bias -> lrelu*sqrt(2) -> clamp
    xm0 = x * s0[:, :, None, None]
    z = lax.conv_general_dilated(xm0, jnp.flip(params["w0"], (2, 3)), (1, 1),
                                 ((2, 2), (2, 2)), lhs_dilation=(2, 2),
                                 dimension_numbers=dn)
    fk_oc = jnp.tile((f2d * 4.0)[None, None], (oc, 1, 1, 1))
    y0 = lax.conv_general_dilated(z, fk_oc, (1, 1), ((1, 1), (1, 1)),
                                  dimension_numbers=dn, feature_group_count=oc)
    y0 = (y0 * d0[:, :, None, None]
          + params["noise0"][None, None] * params["ns0"]
          + params["b0"][None, :, None, None])
    y0 = jnp.clip(jnp.where(y0 >= 0, y0, 0.2 * y0) * g, -clamp, clamp)

    # conv1
    xm1 = y0 * s1[:, :, None, None]
    y1 = lax.conv_general_dilated(xm1, params["w1"], (1, 1), ((1, 1), (1, 1)),
                                  dimension_numbers=dn)
    y1 = (y1 * d1[:, :, None, None]
          + params["noise1"][None, None] * params["ns1"]
          + params["b1"][None, :, None, None])
    y1 = jnp.clip(jnp.where(y1 >= 0, y1, 0.2 * y1) * g, -clamp, clamp)

    # torgb (1x1, linear, clamp)
    xm2 = y1 * s2[:, :, None, None]
    y2 = jnp.einsum("nchw,oc->nohw", xm2, params["w2"][:, :, 0, 0])
    y2 = y2 * d2[:, :, None, None] + params["b2"][None, :, None, None]
    y2 = jnp.clip(y2, -clamp, clamp)

    rgb_out = y2 + _upsample2d_rgb(rgb, f2d)
    return y1, rgb_out


# ----------------------------------------------------------------------------
# Parameters
# ----------------------------------------------------------------------------
def init_params(key):
    c = CFG
    ks = jax.random.split(key, 12)
    p = dict(
        filter=jnp.asarray(_F2D),
        # conv0: in_chs -> out_chs, upsample x2, lrelu, spatial noise
        w0=jax.random.normal(ks[0], (c["out_chs"], c["in_chs"], 3, 3), jnp.float32),
        sty0_w=jax.random.normal(ks[1], (c["in_chs"], c["w_dim"]), jnp.float32),
        sty0_b=jnp.ones((c["in_chs"],), jnp.float32),
        b0=0.01 * jax.random.normal(ks[2], (c["out_chs"],), jnp.float32),
        noise0=jax.random.normal(ks[3], (c["resolution"], c["resolution"]), jnp.float32),
        ns0=jnp.float32(0.1),
        # conv1: out_chs -> out_chs, lrelu, spatial noise
        w1=jax.random.normal(ks[4], (c["out_chs"], c["out_chs"], 3, 3), jnp.float32),
        sty1_w=jax.random.normal(ks[5], (c["out_chs"], c["w_dim"]), jnp.float32),
        sty1_b=jnp.ones((c["out_chs"],), jnp.float32),
        b1=0.01 * jax.random.normal(ks[6], (c["out_chs"],), jnp.float32),
        noise1=jax.random.normal(ks[7], (c["resolution"], c["resolution"]), jnp.float32),
        ns1=jnp.float32(0.1),
        # torgb: out_chs -> 3, 1x1, linear, no noise
        w2=jax.random.normal(ks[8], (3, c["out_chs"], 1, 1), jnp.float32),
        sty2_w=jax.random.normal(ks[9], (c["out_chs"], c["w_dim"]), jnp.float32),
        sty2_b=jnp.ones((c["out_chs"],), jnp.float32),
        b2=0.01 * jax.random.normal(ks[10], (3,), jnp.float32),
    )
    return p


if __name__ == "__main__":
    key = jax.random.PRNGKey(0)
    kp, kx, kr, kw = jax.random.split(key, 4)
    params = init_params(kp)

    N = 2
    x = jax.random.normal(kx, (N, CFG["in_chs"], _IN_RES, _IN_RES), jnp.float32)
    rgb = jax.random.normal(kr, (N, 3, _IN_RES, _IN_RES), jnp.float32)
    wp = jax.random.normal(kw, (N, 3, CFG["w_dim"]), jnp.float32)

    x_out, rgb_out = synthesis_block_forward(params, x, rgb, wp)
    x_out, rgb_out = jax.block_until_ready((x_out, rgb_out))

    assert x_out.shape == (N, CFG["out_chs"], _RES, _RES)
    assert rgb_out.shape == (N, 3, _RES, _RES)
    assert x_out.dtype == jnp.float32 and rgb_out.dtype == jnp.float32
    assert bool(jnp.all(jnp.isfinite(x_out))) and bool(jnp.all(jnp.isfinite(rgb_out)))

    # Numeric check against the pure-JAX reference (loose tolerance: the Pallas
    # path feeds the MXU bf16 operands, the reference is full f32).
    x_ref, rgb_ref = reference_forward(params, x, rgb, wp)
    x_ref, rgb_ref = jax.block_until_ready((x_ref, rgb_ref))

    def _check(a, b, name):
        d = float(jnp.max(jnp.abs(a - b)))
        s = float(jnp.max(jnp.abs(b)))
        assert d <= 0.05 * s + 0.05, f"{name} mismatch: max|diff|={d:.4f} max|ref|={s:.4f}"

    _check(x_out, x_ref, "x")
    _check(rgb_out, rgb_ref, "rgb")

    print("KERNEL_OK")
</pallas_src>

<mosaic_0001>
module attributes {stable_mosaic.version = 11 : i64} {
  func.func @kernel(%arg0: i32, %arg1: memref<1x8x82xf32, #tpu.memory_space<vmem>>, %arg2: memref<1x64x72xbf16, #tpu.memory_space<vmem>>, %arg3: memref<9x64xf32, #tpu.memory_space<vmem>>, %arg4: memref<64x64xf32, #tpu.memory_space<vmem>>, %arg5: memref<1x64x64xf32, #tpu.memory_space<vmem>>) attributes {dimension_semantics = [#tpu.dimension_semantics<parallel>], iteration_bounds = array<i64: 2>, scalar_prefetch = 0 : i64, scratch_operands = 0 : i64, tpu.core_type = #tpu.core_type<tc>, window_params = [{transform_indices = @transform_0, window_bounds = array<i64: 1, 8, 82>}, {transform_indices = @transform_1, window_bounds = array<i64: 1, 64, 72>}, {pipeline_mode = #tpu.pipeline_mode<synchronous>, transform_indices = @transform_2, window_bounds = array<i64: 9, 64>}, {pipeline_mode = #tpu.pipeline_mode<synchronous>, transform_indices = @transform_3, window_bounds = array<i64: 64, 64>}, {transform_indices = @transform_4, window_bounds = array<i64: 1, 64, 64>}]} {
    %c0 = arith.constant 0 : index
    %c0_0 = arith.constant 0 : index
    %c0_1 = arith.constant 0 : index
    %0 = vector.load %arg1[%c0, %c0_0, %c0_1] : memref<1x8x82xf32, #tpu.memory_space<vmem>>, vector<1x8x82xf32>
    %1 = vector.shape_cast %0 : vector<1x8x82xf32> to vector<8x82xf32>
    %c0_2 = arith.constant 0 : index
    %c0_3 = arith.constant 0 : index
    %c0_4 = arith.constant 0 : index
    %2 = vector.load %arg2[%c0_2, %c0_3, %c0_4] : memref<1x64x72xbf16, #tpu.memory_space<vmem>>, vector<1x64x72xbf16>
    %3 = vector.shape_cast %2 : vector<1x64x72xbf16> to vector<64x72xbf16>
    %c0_5 = arith.constant 0 : index
    %c0_6 = arith.constant 0 : index
    %4 = vector.load %arg3[%c0_5, %c0_6] : memref<9x64xf32, #tpu.memory_space<vmem>>, vector<9x64xf32>
    %c0_7 = arith.constant 0 : index
    %c0_8 = arith.constant 0 : index
    %5 = vector.load %arg4[%c0_7, %c0_8] : memref<64x64xf32, #tpu.memory_space<vmem>>, vector<64x64xf32>
    %6 = vector.extract_strided_slice %1 {offsets = [0, 0], sizes = [8, 64], strides = [1, 1]} : vector<8x82xf32> to vector<8x64xf32>
    %7 = vector.extract_strided_slice %4 {offsets = [0, 0], sizes = [1, 64], strides = [1, 1]} : vector<9x64xf32> to vector<1x64xf32>
    %8 = vector.broadcast %7 : vector<1x64xf32> to vector<8x64xf32>
    %9 = arith.mulf %6, %8 : vector<8x64xf32>
    %10 = vector.extract_strided_slice %1 {offsets = [0, 1], sizes = [8, 64], strides = [1, 1]} : vector<8x82xf32> to vector<8x64xf32>
    %11 = vector.extract_strided_slice %4 {offsets = [1, 0], sizes = [1, 64], strides = [1, 1]} : vector<9x64xf32> to vector<1x64xf32>
    %12 = vector.broadcast %11 : vector<1x64xf32> to vector<8x64xf32>
    %13 = arith.mulf %10, %12 : vector<8x64xf32>
    %14 = vector.extract_strided_slice %1 {offsets = [0, 2], sizes = [8, 64], strides = [1, 1]} : vector<8x82xf32> to vector<8x64xf32>
    %15 = vector.extract_strided_slice %4 {offsets = [2, 0], sizes = [1, 64], strides = [1, 1]} : vector<9x64xf32> to vector<1x64xf32>
    %16 = vector.broadcast %15 : vector<1x64xf32> to vector<8x64xf32>
    %17 = arith.mulf %14, %16 : vector<8x64xf32>
    %18 = vector.extract_strided_slice %1 {offsets = [0, 8], sizes = [8, 64], strides = [1, 1]} : vector<8x82xf32> to vector<8x64xf32>
    %19 = vector.extract_strided_slice %4 {offsets = [3, 0], sizes = [1, 64], strides = [1, 1]} : vector<9x64xf32> to vector<1x64xf32>
    %20 = vector.broadcast %19 : vector<1x64xf32> to vector<8x64xf32>
    %21 = arith.mulf %18, %20 : vector<8x64xf32>
    %22 = vector.extract_strided_slice %1 {offsets = [0, 9], sizes = [8, 64], strides = [1, 1]} : vector<8x82xf32> to vector<8x64xf32>
    %23 = vector.extract_strided_slice %1 {offsets = [0, 10], sizes = [8, 64], strides = [1, 1]} : vector<8x82xf32> to vector<8x64xf32>
    %24 = vector.extract_strided_slice %4 {offsets = [5, 0], sizes = [1, 64], strides = [1, 1]} : vector<9x64xf32> to vector<1x64xf32>
    %25 = vector.broadcast %24 : vector<1x64xf32> to vector<8x64xf32>
    %26 = arith.mulf %23, %25 : vector<8x64xf32>
    %27 = vector.extract_strided_slice %1 {offsets = [0, 16], sizes = [8, 64], strides = [1, 1]} : vector<8x82xf32> to vector<8x64xf32>
    %28 = vector.extract_strided_slice %4 {offsets = [6, 0], sizes = [1, 64], strides = [1, 1]} : vector<9x64xf32> to vector<1x64xf32>
    %29 = vector.broadcast %28 : vector<1x64xf32> to vector<8x64xf32>
    %30 = arith.mulf %27, %29 : vector<8x64xf32>
    %31 = vector.extract_strided_slice %1 {offsets = [0, 17], sizes = [8, 64], strides = [1, 1]} : vector<8x82xf32> to vector<8x64xf32>
    %32 = vector.extract_strided_slice %4 {offsets = [7, 0], sizes = [1, 64], strides = [1, 1]} : vector<9x64xf32> to vector<1x64xf32>
    %33 = vector.broadcast %32 : vector<1x64xf32> to vector<8x64xf32>
    %34 = arith.mulf %31, %33 : vector<8x64xf32>
    %35 = vector.extract_strided_slice %1 {offsets = [0, 18], sizes = [8, 64], strides = [1, 1]} : vector<8x82xf32> to vector<8x64xf32>
    %36 = vector.extract_strided_slice %4 {offsets = [8, 0], sizes = [1, 64], strides = [1, 1]} : vector<9x64xf32> to vector<1x64xf32>
    %37 = vector.broadcast %36 : vector<1x64xf32> to vector<8x64xf32>
    %38 = arith.mulf %35, %37 : vector<8x64xf32>
    %39 = tpu.concatenate %9, %13, %17, %21, %22, %26, %30, %34, %38 in 0 : vector<8x64xf32>, vector<8x64xf32>, vector<8x64xf32>, vector<8x64xf32>, vector<8x64xf32>, vector<8x64xf32>, vector<8x64xf32>, vector<8x64xf32>, vector<8x64xf32> -> vector<72x64xf32>
    %40 = arith.truncf %39 : vector<72x64xf32> to vector<72x64xbf16>
    %cst = arith.constant dense<0.000000e+00> : vector<64x64xf32>
    %41 = tpu.matmul %3, %40, %cst {dimension_numbers = #tpu.dot_dimension_numbers<[1], [0], [0], [1], [0, 0, 1, 1], [], []>} : vector<64x72xbf16>, vector<72x64xbf16>, vector<64x64xf32> -> vector<64x64xf32>
    %42 = arith.addf %41, %5 : vector<64x64xf32>
    %cst_9 = arith.constant 2.000000e-01 : f32
    %43 = vector.broadcast %cst_9 : f32 to vector<64x64xf32>
    %44 = arith.mulf %43, %42 : vector<64x64xf32>
    %45 = arith.maximumf %42, %44 : vector<64x64xf32>
    %cst_10 = arith.constant -2.560000e+02 : f32
    %cst_11 = arith.constant 2.560000e+02 : f32
    %46 = vector.broadcast %cst_10 : f32 to vector<64x64xf32>
    %47 = arith.maximumf %46, %45 : vector<64x64xf32>
    %48 = vector.broadcast %cst_11 : f32 to vector<64x64xf32>
    %49 = arith.minimumf %48, %47 : vector<64x64xf32>
    %c0_12 = arith.constant 0 : index
    %c0_13 = arith.constant 0 : index
    %c0_14 = arith.constant 0 : index
    %50 = vector.load %arg5[%c0_12, %c0_13, %c0_14] : memref<1x64x64xf32, #tpu.memory_space<vmem>>, vector<1x64x64xf32>
    %51 = vector.shape_cast %50 : vector<1x64x64xf32> to vector<64x64xf32>
    %52 = vector.shape_cast %49 : vector<64x64xf32> to vector<1x64x64xf32>
    tpu.vector_store %arg5[%c0_12, %c0_13, %c0_14], %52 {strides = array<i32>} : memref<1x64x64xf32, #tpu.memory_space<vmem>>, vector<1x64x64xf32>,
    return
  }
  func.func @transform_0(%arg0: i32) -> (i32, i32, i32) {
    %c0_i32 = arith.constant 0 : i32
    %c0_i32_0 = arith.constant 0 : i32
    %c0_i32_1 = arith.constant 0 : i32
    return %arg0, %c0_i32, %c0_i32_0 : i32, i32, i32
  }
  func.func @transform_1(%arg0: i32) -> (i32, i32, i32) {
    %c0_i32 = arith.constant 0 : i32
    %c0_i32_0 = arith.constant 0 : i32
    %c0_i32_1 = arith.constant 0 : i32
    return %arg0, %c0_i32, %c0_i32_0 : i32, i32, i32
  }
  func.func @transform_2(%arg0: i32) -> (i32, i32) {
    %c0_i32 = arith.constant 0 : i32
    %c0_i32_0 = arith.constant 0 : i32
    %c0_i32_1 = arith.constant 0 : i32
    return %c0_i32, %c0_i32_0 : i32, i32
  }
  func.func @transform_3(%arg0: i32) -> (i32, i32) {
    %c0_i32 = arith.constant 0 : i32
    %c0_i32_0 = arith.constant 0 : i32
    %c0_i32_1 = arith.constant 0 : i32
    return %c0_i32, %c0_i32_0 : i32, i32
  }
  func.func @transform_4(%arg0: i32) -> (i32, i32, i32) {
    %c0_i32 = arith.constant 0 : i32
    %c0_i32_0 = arith.constant 0 : i32
    %c0_i32_1 = arith.constant 0 : i32
    return %arg0, %c0_i32, %c0_i32_0 : i32, i32, i32
  }
}

module attributes {stable_mosaic.version = 11 : i64} {
  func.func @kernel(%arg0: i32, %arg1: memref<1x16x290xf32, #tpu.memory_space<vmem>>, %arg2: memref<1x16x144xbf16, #tpu.memory_space<vmem>>, %arg3: memref<9x256xf32, #tpu.memory_space<vmem>>, %arg4: memref<16x256xf32, #tpu.memory_space<vmem>>, %arg5: memref<1x3x16xf32, #tpu.memory_space<vmem>>, %arg6: memref<3x1xf32, #tpu.memory_space<vmem>>, %arg7: memref<1x3x256xf32, #tpu.memory_space<vmem>>, %arg8: memref<1x16x256xf32, #tpu.memory_space<vmem>>, %arg9: memref<1x3x256xf32, #tpu.memory_space<vmem>>) attributes {dimension_semantics = [#tpu.dimension_semantics<parallel>], iteration_bounds = array<i64: 2>, scalar_prefetch = 0 : i64, scratch_operands = 0 : i64, tpu.core_type = #tpu.core_type<tc>, window_params = [{transform_indices = @transform_0, window_bounds = array<i64: 1, 16, 290>}, {transform_indices = @transform_1, window_bounds = array<i64: 1, 16, 144>}, {pipeline_mode = #tpu.pipeline_mode<synchronous>, transform_indices = @transform_2, window_bounds = array<i64: 9, 256>}, {pipeline_mode = #tpu.pipeline_mode<synchronous>, transform_indices = @transform_3, window_bounds = array<i64: 16, 256>}, {transform_indices = @transform_4, window_bounds = array<i64: 1, 3, 16>}, {pipeline_mode = #tpu.pipeline_mode<synchronous>, transform_indices = @transform_5, window_bounds = array<i64: 3, 1>}, {transform_indices = @transform_6, window_bounds = array<i64: 1, 3, 256>}, {transform_indices = @transform_7, window_bounds = array<i64: 1, 16, 256>}, {transform_indices = @transform_8, window_bounds = array<i64: 1, 3, 256>}]} {
    %c0 = arith.constant 0 : index
    %c0_0 = arith.constant 0 : index
    %c0_1 = arith.constant 0 : index
    %0 = vector.load %arg1[%c0, %c0_0, %c0_1] : memref<1x16x290xf32, #tpu.memory_space<vmem>>, vector<1x16x290xf32>
    %1 = vector.shape_cast %0 : vector<1x16x290xf32> to vector<16x290xf32>
    %c0_2 = arith.constant 0 : index
    %c0_3 = arith.constant 0 : index
    %c0_4 = arith.constant 0 : index
    %2 = vector.load %arg2[%c0_2, %c0_3, %c0_4] : memref<1x16x144xbf16, #tpu.memory_space<vmem>>, vector<1x16x144xbf16>
    %3 = vector.shape_cast %2 : vector<1x16x144xbf16> to vector<16x144xbf16>
    %c0_5 = arith.constant 0 : index
    %c0_6 = arith.constant 0 : index
    %4 = vector.load %arg3[%c0_5, %c0_6] : memref<9x256xf32, #tpu.memory_space<vmem>>, vector<9x256xf32>
    %c0_7 = arith.constant 0 : index
    %c0_8 = arith.constant 0 : index
    %5 = vector.load %arg4[%c0_7, %c0_8] : memref<16x256xf32, #tpu.memory_space<vmem>>, vector<16x256xf32>
    %6 = vector.extract_strided_slice %1 {offsets = [0, 0], sizes = [16, 256], strides = [1, 1]} : vector<16x290xf32> to vector<16x256xf32>
    %7 = vector.extract_strided_slice %4 {offsets = [0, 0], sizes = [1, 256], strides = [1, 1]} : vector<9x256xf32> to vector<1x256xf32>
    %8 = vector.broadcast %7 : vector<1x256xf32> to vector<16x256xf32>
    %9 = arith.mulf %6, %8 : vector<16x256xf32>
    %10 = vector.extract_strided_slice %1 {offsets = [0, 1], sizes = [16, 256], strides = [1, 1]} : vector<16x290xf32> to vector<16x256xf32>
    %11 = vector.extract_strided_slice %4 {offsets = [1, 0], sizes = [1, 256], strides = [1, 1]} : vector<9x256xf32> to vector<1x256xf32>
    %12 = vector.broadcast %11 : vector<1x256xf32> to vector<16x256xf32>
    %13 = arith.mulf %10, %12 : vector<16x256xf32>
    %14 = vector.extract_strided_slice %1 {offsets = [0, 2], sizes = [16, 256], strides = [1, 1]} : vector<16x290xf32> to vector<16x256xf32>
    %15 = vector.extract_strided_slice %4 {offsets = [2, 0], sizes = [1, 256], strides = [1, 1]} : vector<9x256xf32> to vector<1x256xf32>
    %16 = vector.broadcast %15 : vector<1x256xf32> to vector<16x256xf32>
    %17 = arith.mulf %14, %16 : vector<16x256xf32>
    %18 = vector.extract_strided_slice %1 {offsets = [0, 16], sizes = [16, 256], strides = [1, 1]} : vector<16x290xf32> to vector<16x256xf32>
    %19 = vector.extract_strided_slice %4 {offsets = [3, 0], sizes = [1, 256], strides = [1, 1]} : vector<9x256xf32> to vector<1x256xf32>
    %20 = vector.broadcast %19 : vector<1x256xf32> to vector<16x256xf32>
    %21 = arith.mulf %18, %20 : vector<16x256xf32>
    %22 = vector.extract_strided_slice %1 {offsets = [0, 17], sizes = [16, 256], strides = [1, 1]} : vector<16x290xf32> to vector<16x256xf32>
    %23 = vector.extract_strided_slice %1 {offsets = [0, 18], sizes = [16, 256], strides = [1, 1]} : vector<16x290xf32> to vector<16x256xf32>
    %24 = vector.extract_strided_slice %4 {offsets = [5, 0], sizes = [1, 256], strides = [1, 1]} : vector<9x256xf32> to vector<1x256xf32>
    %25 = vector.broadcast %24 : vector<1x256xf32> to vector<16x256xf32>
    %26 = arith.mulf %23, %25 : vector<16x256xf32>
    %27 = vector.extract_strided_slice %1 {offsets = [0, 32], sizes = [16, 256], strides = [1, 1]} : vector<16x290xf32> to vector<16x256xf32>
    %28 = vector.extract_strided_slice %4 {offsets = [6, 0], sizes = [1, 256], strides = [1, 1]} : vector<9x256xf32> to vector<1x256xf32>
    %29 = vector.broadcast %28 : vector<1x256xf32> to vector<16x256xf32>
    %30 = arith.mulf %27, %29 : vector<16x256xf32>
    %31 = vector.extract_strided_slice %1 {offsets = [0, 33], sizes = [16, 256], strides = [1, 1]} : vector<16x290xf32> to vector<16x256xf32>
    %32 = vector.extract_strided_slice %4 {offsets = [7, 0], sizes = [1, 256], strides = [1, 1]} : vector<9x256xf32> to vector<1x256xf32>
    %33 = vector.broadcast %32 : vector<1x256xf32> to vector<16x256xf32>
    %34 = arith.mulf %31, %33 : vector<16x256xf32>
    %35 = vector.extract_strided_slice %1 {offsets = [0, 34], sizes = [16, 256], strides = [1, 1]} : vector<16x290xf32> to vector<16x256xf32>
    %36 = vector.extract_strided_slice %4 {offsets = [8, 0], sizes = [1, 256], strides = [1, 1]} : vector<9x256xf32> to vector<1x256xf32>
    %37 = vector.broadcast %36 : vector<1x256xf32> to vector<16x256xf32>
    %38 = arith.mulf %35, %37 : vector<16x256xf32>
    %39 = tpu.concatenate %9, %13, %17, %21, %22, %26, %30, %34, %38 in 0 : vector<16x256xf32>, vector<16x256xf32>, vector<16x256xf32>, vector<16x256xf32>, vector<16x256xf32>, vector<16x256xf32>, vector<16x256xf32>, vector<16x256xf32>, vector<16x256xf32> -> vector<144x256xf32>
    %40 = arith.truncf %39 : vector<144x256xf32> to vector<144x256xbf16>
    %cst = arith.constant dense<0.000000e+00> : vector<16x256xf32>
    %41 = tpu.matmul %3, %40, %cst {dimension_numbers = #tpu.dot_dimension_numbers<[1], [0], [0], [1], [0, 0, 1, 1], [], []>} : vector<16x144xbf16>, vector<144x256xbf16>, vector<16x256xf32> -> vector<16x256xf32>
    %42 = arith.addf %41, %5 : vector<16x256xf32>
    %cst_9 = arith.constant 2.000000e-01 : f32
    %43 = vector.broadcast %cst_9 : f32 to vector<16x256xf32>
    %44 = arith.mulf %43, %42 : vector<16x256xf32>
    %45 = arith.maximumf %42, %44 : vector<16x256xf32>
    %cst_10 = arith.constant -2.560000e+02 : f32
    %cst_11 = arith.constant 2.560000e+02 : f32
    %46 = vector.broadcast %cst_10 : f32 to vector<16x256xf32>
    %47 = arith.maximumf %46, %45 : vector<16x256xf32>
    %48 = vector.broadcast %cst_11 : f32 to vector<16x256xf32>
    %49 = arith.minimumf %48, %47 : vector<16x256xf32>
    %c0_12 = arith.constant 0 : index
    %c0_13 = arith.constant 0 : index
    %c0_14 = arith.constant 0 : index
    %50 = vector.load %arg8[%c0_12, %c0_13, %c0_14] : memref<1x16x256xf32, #tpu.memory_space<vmem>>, vector<1x16x256xf32>
    %51 = vector.shape_cast %50 : vector<1x16x256xf32> to vector<16x256xf32>
    %52 = vector.shape_cast %49 : vector<16x256xf32> to vector<1x16x256xf32>
    tpu.vector_store %arg8[%c0_12, %c0_13, %c0_14], %52 {strides = array<i32>} : memref<1x16x256xf32, #tpu.memory_space<vmem>>, vector<1x16x256xf32>,
    %c0_15 = arith.constant 0 : index
    %c0_16 = arith.constant 0 : index
    %c0_17 = arith.constant 0 : index
    %53 = vector.load %arg5[%c0_15, %c0_16, %c0_17] : memref<1x3x16xf32, #tpu.memory_space<vmem>>, vector<1x3x16xf32>
    %54 = vector.shape_cast %53 : vector<1x3x16xf32> to vector<3x16xf32>
    %cst_18 = arith.constant dense<0.000000e+00> : vector<3x256xf32>
    %55 = tpu.matmul %54, %49, %cst_18 {dimension_numbers = #tpu.dot_dimension_numbers<[1], [0], [0], [1], [0, 0, 1, 1], [], []>} : vector<3x16xf32>, vector<16x256xf32>, vector<3x256xf32> -> vector<3x256xf32>
    %c0_19 = arith.constant 0 : index
    %c0_20 = arith.constant 0 : index
    %56 = vector.load %arg6[%c0_19, %c0_20] : memref<3x1xf32, #tpu.memory_space<vmem>>, vector<3x1xf32>
    %57 = vector.broadcast %56 : vector<3x1xf32> to vector<3x256xf32>
    %58 = arith.addf %55, %57 : vector<3x256xf32>
    %cst_21 = arith.constant -2.560000e+02 : f32
    %cst_22 = arith.constant 2.560000e+02 : f32
    %59 = vector.broadcast %cst_21 : f32 to vector<3x256xf32>
    %60 = arith.maximumf %59, %58 : vector<3x256xf32>
    %61 = vector.broadcast %cst_22 : f32 to vector<3x256xf32>
    %62 = arith.minimumf %61, %60 : vector<3x256xf32>
    %c0_23 = arith.constant 0 : index
    %c0_24 = arith.constant 0 : index
    %c0_25 = arith.constant 0 : index
    %63 = vector.load %arg7[%c0_23, %c0_24, %c0_25] : memref<1x3x256xf32, #tpu.memory_space<vmem>>, vector<1x3x256xf32>
    %64 = vector.shape_cast %63 : vector<1x3x256xf32> to vector<3x256xf32>
    %65 = arith.addf %62, %64 : vector<3x256xf32>
    %c0_26 = arith.constant 0 : index
    %c0_27 = arith.constant 0 : index
    %c0_28 = arith.constant 0 : index
    %66 = vector.load %arg9[%c0_26, %c0_27, %c0_28] : memref<1x3x256xf32, #tpu.memory_space<vmem>>, vector<1x3x256xf32>
    %67 = vector.shape_cast %66 : vector<1x3x256xf32> to vector<3x256xf32>
    %68 = vector.shape_cast %65 : vector<3x256xf32> to vector<1x3x256xf32>
    tpu.vector_store %arg9[%c0_26, %c0_27, %c0_28], %68 {strides = array<i32>} : memref<1x3x256xf32, #tpu.memory_space<vmem>>, vector<1x3x256xf32>,
    return
  }
  func.func @transform_0(%arg0: i32) -> (i32, i32, i32) {
    %c0_i32 = arith.constant 0 : i32
    %c0_i32_0 = arith.constant 0 : i32
    %c0_i32_1 = arith.constant 0 : i32
    return %arg0, %c0_i32, %c0_i32_0 : i32, i32, i32
  }
  func.func @transform_1(%arg0: i32) -> (i32, i32, i32) {
    %c0_i32 = arith.constant 0 : i32
    %c0_i32_0 = arith.constant 0 : i32
    %c0_i32_1 = arith.constant 0 : i32
    return %arg0, %c0_i32, %c0_i32_0 : i32, i32, i32
  }
  func.func @transform_2(%arg0: i32) -> (i32, i32) {
    %c0_i32 = arith.constant 0 : i32
    %c0_i32_0 = arith.constant 0 : i32
    %c0_i32_1 = arith.constant 0 : i32
    return %c0_i32, %c0_i32_0 : i32, i32
  }
  func.func @transform_3(%arg0: i32) -> (i32, i32) {
    %c0_i32 = arith.constant 0 : i32
    %c0_i32_0 = arith.constant 0 : i32
    %c0_i32_1 = arith.constant 0 : i32
    return %c0_i32, %c0_i32_0 : i32, i32
  }
  func.func @transform_4(%arg0: i32) -> (i32, i32, i32) {
    %c0_i32 = arith.constant 0 : i32
    %c0_i32_0 = arith.constant 0 : i32
    %c0_i32_1 = arith.constant 0 : i32
    return %arg0, %c0_i32, %c0_i32_0 : i32, i32, i32
  }
  func.func @transform_5(%arg0: i32) -> (i32, i32) {
    %c0_i32 = arith.constant 0 : i32
    %c0_i32_0 = arith.constant 0 : i32
    %c0_i32_1 = arith.constant 0 : i32
    return %c0_i32, %c0_i32_0 : i32, i32
  }
  func.func @transform_6(%arg0: i32) -> (i32, i32, i32) {
    %c0_i32 = arith.constant 0 : i32
    %c0_i32_0 = arith.constant 0 : i32
    %c0_i32_1 = arith.constant 0 : i32
    return %arg0, %c0_i32, %c0_i32_0 : i32, i32, i32
  }
  func.func @transform_7(%arg0: i32) -> (i32, i32, i32) {
    %c0_i32 = arith.constant 0 : i32
    %c0_i32_0 = arith.constant 0 : i32
    %c0_i32_1 = arith.constant 0 : i32
    return %arg0, %c0_i32, %c0_i32_0 : i32, i32, i32
  }
  func.func @transform_8(%arg0: i32) -> (i32, i32, i32) {
    %c0_i32 = arith.constant 0 : i32
    %c0_i32_0 = arith.constant 0 : i32
    %c0_i32_1 = arith.constant 0 : i32
    return %arg0, %c0_i32, %c0_i32_0 : i32, i32, i32
  }
}

</mosaic_0001>

<bundles_post_ra>
// kernel: mul.102
= control target key start
LH: loop header
LB: loop body
LE: loop exit
PB: predicated region body
PF: predicated region fallthrough
CT: control target
= control target key end

     0   :  { %vm363_vm0 = vcmask 1047556   ;;  %s909_s10 = smov 48   ;;  %vm365_vm1 = vcmask 130048   ;;  %s911_s12 = smov 16   ;;  %vm447_vm2 = vcmask 523648   ;;  %vm545_vm3 = vcmask 392448   ;;  %s1345_s0 = inlined_call_operand.vmem [shape: f32[3,3,4,16,8], index: 0, kind: input, shape index: {}]   ;;  %s1346_s1 = inlined_call_operand.vmem [shape: f32[9,64,8], index: 1, kind: output, shape index: {}]  }
   0x1   :  { %v867_v0 = vld [vmem:[%s1345_s0 + $0x1c] sm:$0xf]  ;;  %v868_v1 = vld [vmem:[%s1345_s0 + $0x18] sm:$0xf]  ;;  %v869_v2 = vld [vmem:[%s1345_s0 + $0x14] sm:$0xf] }
   0x2   :  { %329 = vst [vmem:[#allocation0 + $0x38] sm:$0xf] %v867_v0  ;;  %334 = vst [vmem:[#allocation0 + $0x30] sm:$0xf] %v868_v1  ;;  %v870_v3 = vld [vmem:[%s1345_s0 + $0x10] sm:$0xf] }
   0x3   :  { %339 = vst [vmem:[#allocation0 + $0x28] sm:$0xf] %v869_v2  ;;  %v871_v4 = vld [vmem:[%s1345_s0 + $0xc] sm:$0xf]  ;;  %v872_v5 = vld [vmem:[%s1345_s0 + $0x8] sm:$0xf] }
   0x4   :  { %344 = vst [vmem:[#allocation0 + $0x20] sm:$0xf] %v870_v3  ;;  %349 = vst [vmem:[#allocation0 + $0x18] sm:$0xf] %v871_v4  ;;  %v873_v6 = vld [vmem:[%s1345_s0 + $0x4] sm:$0xf] }
   0x5   :  { %354 = vst [vmem:[#allocation0 + $0x10] sm:$0xf] %v872_v5  ;;  %v359_v7 = vld [vmem:[%s1345_s0] sm:$0xf]  ;;  %358 = vst [vmem:[#allocation0 + $0x8] sm:$0xf] %v873_v6 }
   0x6   :  { %360 = vst [vmem:[#allocation0] sm:$0xf] %v359_v7  ;;  %v835_v8 = vld [vmem:[%s1345_s0 + $0x9c] sm:$0xf]  ;;  %v836_v9 = vld [vmem:[%s1345_s0 + $0x98] sm:$0xf] }
   0x7   :  { %v837_v10 = vld [vmem:[%s1345_s0 + $0x94] sm:$0xf]  ;;  %169 = vst [vmem:[#allocation0 + $0x138] sm:$0xf] %v835_v8  ;;  %174 = vst [vmem:[#allocation0 + $0x130] sm:$0xf] %v836_v9 }
   0x8   :  { %179 = vst [vmem:[#allocation0 + $0x128] sm:$0xf] %v837_v10  ;;  %v838_v11 = vld [vmem:[%s1345_s0 + $0x90] sm:$0xf]  ;;  %v839_v12 = vld [vmem:[%s1345_s0 + $0x8c] sm:$0xf] }
   0x9   :  { %v840_v13 = vld [vmem:[%s1345_s0 + $0x88] sm:$0xf]  ;;  %184 = vst [vmem:[#allocation0 + $0x120] sm:$0xf] %v838_v11  ;;  %189 = vst [vmem:[#allocation0 + $0x118] sm:$0xf] %v839_v12 }
   0xa   :  { %194 = vst [vmem:[#allocation0 + $0x110] sm:$0xf] %v840_v13  ;;  %v841_v14 = vld [vmem:[%s1345_s0 + $0x84] sm:$0xf]  ;;  %v842_v15 = vld [vmem:[%s1345_s0 + $0x80] sm:$0xf] }
   0xb   :  { %v803_v16 = vld [vmem:[%s1345_s0 + $0x11c] sm:$0xf]  ;;  %199 = vst [vmem:[#allocation0 + $0x108] sm:$0xf] %v841_v14  ;;  %204 = vst [vmem:[#allocation0 + $0x100] sm:$0xf] %v842_v15 }
   0xc   :  { %9 = vst [vmem:[#allocation0 + $0x238] sm:$0xf] %v803_v16  ;;  %v804_v17 = vld [vmem:[%s1345_s0 + $0x118] sm:$0xf]  ;;  %v805_v18 = vld [vmem:[%s1345_s0 + $0x114] sm:$0xf] }
   0xd   :  { %v806_v19 = vld [vmem:[%s1345_s0 + $0x110] sm:$0xf]  ;;  %14 = vst [vmem:[#allocation0 + $0x230] sm:$0xf] %v804_v17  ;;  %19 = vst [vmem:[#allocation0 + $0x228] sm:$0xf] %v805_v18 }
   0xe   :  { %24 = vst [vmem:[#allocation0 + $0x220] sm:$0xf] %v806_v19  ;;  %v807_v20 = vld [vmem:[%s1345_s0 + $0x10c] sm:$0xf]  ;;  %v808_v21 = vld [vmem:[%s1345_s0 + $0x108] sm:$0xf] }
   0xf   :  { %v809_v22 = vld [vmem:[%s1345_s0 + $0x104] sm:$0xf]  ;;  %29 = vst [vmem:[#allocation0 + $0x218] sm:$0xf] %v807_v20  ;;  %34 = vst [vmem:[#allocation0 + $0x210] sm:$0xf] %v808_v21 }
  0x10   :  { %39 = vst [vmem:[#allocation0 + $0x208] sm:$0xf] %v809_v22  ;;  %v810_v23 = vld [vmem:[%s1345_s0 + $0x100] sm:$0xf]  ;;  %v827_v24 = vld [vmem:[%s1345_s0 + $0xbc] sm:$0xf] }
  0x11   :  { %v828_v25 = vld [vmem:[%s1345_s0 + $0xb8] sm:$0xf]  ;;  %44 = vst [vmem:[#allocation0 + $0x200] sm:$0xf] %v810_v23  ;;  %129 = vst [vmem:[#allocation0 + $0x178] sm:$0xf] %v827_v24 }
  0x12   :  { %v442_v26 = vld [vmem:[#allocation0 + $0x3] ss:$8 sm:$0xf0]   ;;  %134 = vst [vmem:[#allocation0 + $0x170] sm:$0xf] %v828_v25  ;;  %vm643_vm4 = vcmask 261248  }
  0x13   :  { %v829_v27 = vld [vmem:[%s1345_s0 + $0xb4] sm:$0xf]  ;;  %v440_v28 = vld [vmem:[#allocation0 + $0x3] ss:$8 sm:$0xf]  }
  0x14   :  { %139 = vst [vmem:[#allocation0 + $0x168] sm:$0xf] %v829_v27  ;;  %v830_v29 = vld [vmem:[%s1345_s0 + $0xb0] sm:$0xf]  ;;  %v444_v30 = vsel %vm363_vm0, %v442_v26, %v440_v28  ;;  %v831_v31 = vld [vmem:[%s1345_s0 + $0xac] sm:$0xf] }
  0x15   :  { %144 = vst [vmem:[#allocation0 + $0x160] sm:$0xf] %v830_v29  ;;  %v832_v32 = vld [vmem:[%s1345_s0 + $0xa8] sm:$0xf]  ;;  %v833_v33 = vld [vmem:[%s1345_s0 + $0xa4] sm:$0xf]  ;;  %445 = vrot.lane.b32.xlu0 %v444_v30, %s909_s10 }
  0x16   :  { %v452_v34 = vld [vmem:[#allocation0 + $0x103] ss:$8 sm:$0xf0]   ;;  %149 = vst [vmem:[#allocation0 + $0x158] sm:$0xf] %v831_v31 }
  0x17   :  { %154 = vst [vmem:[#allocation0 + $0x150] sm:$0xf] %v832_v32  ;;  %159 = vst [vmem:[#allocation0 + $0x148] sm:$0xf] %v833_v33  ;;  %v834_v35 = vld [vmem:[%s1345_s0 + $0xa0] sm:$0xf] }
  0x18   :  { %v450_v36 = vld [vmem:[#allocation0 + $0x103] ss:$8 sm:$0xf]   ;;  %164 = vst [vmem:[#allocation0 + $0x140] sm:$0xf] %v834_v35 }
  0x19   :  { %v859_v37 = vld [vmem:[%s1345_s0 + $0x3c] sm:$0xf]  ;;  %v454_v38 = vsel %vm363_vm0, %v452_v34, %v450_v36  ;;  %v463_v39 = vld [vmem:[#allocation0 + $0x203] ss:$8 sm:$0xf0]  }
  0x1a   :  { %289 = vst [vmem:[#allocation0 + $0x78] sm:$0xf] %v859_v37  ;;  %v860_v40 = vld [vmem:[%s1345_s0 + $0x38] sm:$0xf]  ;;  %v861_v41 = vld [vmem:[%s1345_s0 + $0x34] sm:$0xf]  ;;  %455 = vrot.lane.b32.xlu0 %v454_v38, %s909_s10 }
  0x1b   :  { %294 = vst [vmem:[#allocation0 + $0x70] sm:$0xf] %v860_v40  ;;  %v862_v42 = vld [vmem:[%s1345_s0 + $0x30] sm:$0xf]  ;;  %v863_v43 = vld [vmem:[%s1345_s0 + $0x2c] sm:$0xf] }
  0x1c   :  { %v461_v44 = vld [vmem:[#allocation0 + $0x203] ss:$8 sm:$0xf]   ;;  %299 = vst [vmem:[#allocation0 + $0x68] sm:$0xf] %v861_v41 }
  0x1d   :  { %304 = vst [vmem:[#allocation0 + $0x60] sm:$0xf] %v862_v42  ;;  %309 = vst [vmem:[#allocation0 + $0x58] sm:$0xf] %v863_v43  ;;  %v864_v45 = vld [vmem:[%s1345_s0 + $0x28] sm:$0xf]  ;;  %v465_v46 = vsel %vm363_vm0, %v463_v39, %v461_v44 }
  0x1e   :  { %314 = vst [vmem:[#allocation0 + $0x50] sm:$0xf] %v864_v45  ;;  %v865_v47 = vld [vmem:[%s1345_s0 + $0x24] sm:$0xf]  ;;  %v866_v48 = vld [vmem:[%s1345_s0 + $0x20] sm:$0xf]  ;;  %466 = vrot.lane.b32.xlu1 %v465_v46, %s909_s10 }
  0x1f   :  { %v819_v49 = vld [vmem:[%s1345_s0 + $0xdc] sm:$0xf]  ;;  %v485_v50 = vld [vmem:[#allocation0 + $0x143] ss:$8 sm:$0xf0]  }
  0x20   :  { %319 = vst [vmem:[#allocation0 + $0x48] sm:$0xf] %v865_v47  ;;  %324 = vst [vmem:[#allocation0 + $0x40] sm:$0xf] %v866_v48  ;;  %v820_v51 = vld [vmem:[%s1345_s0 + $0xd8] sm:$0xf] }
  0x21   :  { %89 = vst [vmem:[#allocation0 + $0x1b8] sm:$0xf] %v819_v49  ;;  %94 = vst [vmem:[#allocation0 + $0x1b0] sm:$0xf] %v820_v51  ;;  %v821_v52 = vld [vmem:[%s1345_s0 + $0xd4] sm:$0xf] }
  0x22   :  { %v822_v53 = vld [vmem:[%s1345_s0 + $0xd0] sm:$0xf]  ;;  %v823_v54 = vld [vmem:[%s1345_s0 + $0xcc] sm:$0xf]  ;;  %99 = vst [vmem:[#allocation0 + $0x1a8] sm:$0xf] %v821_v52 }
  0x23   :  { %v483_v55 = vld [vmem:[#allocation0 + $0x143] ss:$8 sm:$0xf]   ;;  %104 = vst [vmem:[#allocation0 + $0x1a0] sm:$0xf] %v822_v53 }
  0x24   :  { %109 = vst [vmem:[#allocation0 + $0x198] sm:$0xf] %v823_v54  ;;  %v824_v56 = vld [vmem:[%s1345_s0 + $0xc8] sm:$0xf]  ;;  %v487_v57 = vsel %vm363_vm0, %v485_v50, %v483_v55  ;;  %v825_v58 = vld [vmem:[%s1345_s0 + $0xc4] sm:$0xf] }
  0x25   :  { %114 = vst [vmem:[#allocation0 + $0x190] sm:$0xf] %v824_v56  ;;  %v826_v59 = vld [vmem:[%s1345_s0 + $0xc0] sm:$0xf]  ;;  %v851_v60 = vld [vmem:[%s1345_s0 + $0x5c] sm:$0xf]  ;;  %488 = vrot.lane.b32.xlu0 %v487_v57, %s909_s10 }
  0x26   :  { %119 = vst [vmem:[#allocation0 + $0x188] sm:$0xf] %v825_v58  ;;  %124 = vst [vmem:[#allocation0 + $0x180] sm:$0xf] %v826_v59  ;;  %v852_v61 = vld [vmem:[%s1345_s0 + $0x58] sm:$0xf] }
  0x27   :  { %249 = vst [vmem:[#allocation0 + $0xb8] sm:$0xf] %v851_v60  ;;  %v853_v62 = vld [vmem:[%s1345_s0 + $0x54] sm:$0xf]  ;;  %v854_v63 = vld [vmem:[%s1345_s0 + $0x50] sm:$0xf] }
  0x28   :  { %v474_v0 = vld [vmem:[#allocation0 + $0x43] ss:$8 sm:$0xf0]   ;;  %254 = vst [vmem:[#allocation0 + $0xb0] sm:$0xf] %v852_v61 }
  0x29   :  { %259 = vst [vmem:[#allocation0 + $0xa8] sm:$0xf] %v853_v62  ;;  %264 = vst [vmem:[#allocation0 + $0xa0] sm:$0xf] %v854_v63  ;;  %v855_v1 = vld [vmem:[%s1345_s0 + $0x4c] sm:$0xf] }
  0x2a   :  { %269 = vst [vmem:[#allocation0 + $0x98] sm:$0xf] %v855_v1  ;;  %v856_v2 = vld [vmem:[%s1345_s0 + $0x48] sm:$0xf]  ;;  %v857_v3 = vld [vmem:[%s1345_s0 + $0x44] sm:$0xf] }
  0x2b   :  { %v858_v4 = vld [vmem:[%s1345_s0 + $0x40] sm:$0xf]  ;;  %274 = vst [vmem:[#allocation0 + $0x90] sm:$0xf] %v856_v2  ;;  %279 = vst [vmem:[#allocation0 + $0x88] sm:$0xf] %v857_v3 }
  0x2c   :  { %v472_v5 = vld [vmem:[#allocation0 + $0x43] ss:$8 sm:$0xf]   ;;  %284 = vst [vmem:[#allocation0 + $0x80] sm:$0xf] %v858_v4 }
  0x2d   :  { %v811_v6 = vld [vmem:[%s1345_s0 + $0xfc] sm:$0xf]  ;;  %v476_v7 = vsel %vm363_vm0, %v474_v0, %v472_v5  ;;  %v812_v8 = vld [vmem:[%s1345_s0 + $0xf8] sm:$0xf]  ;;  %v813_v9 = vld [vmem:[%s1345_s0 + $0xf4] sm:$0xf] }
  0x2e   :  { %49 = vst [vmem:[#allocation0 + $0x1f8] sm:$0xf] %v811_v6  ;;  %v814_v10 = vld [vmem:[%s1345_s0 + $0xf0] sm:$0xf]  ;;  %477 = vrot.lane.b32.xlu1 %v476_v7, %s909_s10  ;;  %54 = vst [vmem:[#allocation0 + $0x1f0] sm:$0xf] %v812_v8 }
  0x2f   :  { %v507_v11 = vld [vmem:[#allocation0 + $0x183] ss:$8 sm:$0xf0]   ;;  %59 = vst [vmem:[#allocation0 + $0x1e8] sm:$0xf] %v813_v9 }
  0x30   :  { %64 = vst [vmem:[#allocation0 + $0x1e0] sm:$0xf] %v814_v10  ;;  %v815_v12 = vld [vmem:[%s1345_s0 + $0xec] sm:$0xf]  ;;  %v816_v13 = vld [vmem:[%s1345_s0 + $0xe8] sm:$0xf] }
  0x31   :  { %69 = vst [vmem:[#allocation0 + $0x1d8] sm:$0xf] %v815_v12  ;;  %v817_v14 = vld [vmem:[%s1345_s0 + $0xe4] sm:$0xf]  ;;  %v818_v15 = vld [vmem:[%s1345_s0 + $0xe0] sm:$0xf] }
  0x32   :  { %v505_v16 = vld [vmem:[#allocation0 + $0x183] ss:$8 sm:$0xf]   ;;  %74 = vst [vmem:[#allocation0 + $0x1d0] sm:$0xf] %v816_v13 }
  0x33   :  { %79 = vst [vmem:[#allocation0 + $0x1c8] sm:$0xf] %v817_v14  ;;  %84 = vst [vmem:[#allocation0 + $0x1c0] sm:$0xf] %v818_v15  ;;  %v843_v17 = vld [vmem:[%s1345_s0 + $0x7c] sm:$0xf]  ;;  %v509_v18 = vsel %vm363_vm0, %v507_v11, %v505_v16 }
  0x34   :  { %v496_v19 = vld [vmem:[#allocation0 + $0x83] ss:$8 sm:$0xf0]   ;;  %209 = vst [vmem:[#allocation0 + $0xf8] sm:$0xf] %v843_v17  ;;  %510 = vrot.lane.b32.xlu0 %v509_v18, %s909_s10 }
  0x35   :  { %v844_v20 = vld [vmem:[%s1345_s0 + $0x78] sm:$0xf]  ;;  %v845_v21 = vld [vmem:[%s1345_s0 + $0x74] sm:$0xf]  ;;  %v846_v22 = vld [vmem:[%s1345_s0 + $0x70] sm:$0xf] }
  0x36   :  { %214 = vst [vmem:[#allocation0 + $0xf0] sm:$0xf] %v844_v20  ;;  %v847_v23 = vld [vmem:[%s1345_s0 + $0x6c] sm:$0xf]  ;;  %219 = vst [vmem:[#allocation0 + $0xe8] sm:$0xf] %v845_v21 }
  0x37   :  { %v494_v24 = vld [vmem:[#allocation0 + $0x83] ss:$8 sm:$0xf]   ;;  %224 = vst [vmem:[#allocation0 + $0xe0] sm:$0xf] %v846_v22 }
  0x38   :  { %229 = vst [vmem:[#allocation0 + $0xd8] sm:$0xf] %v847_v23  ;;  %v848_v25 = vld [vmem:[%s1345_s0 + $0x68] sm:$0xf]  ;;  %v498_v26 = vsel %vm363_vm0, %v496_v19, %v494_v24  ;;  %v849_v27 = vld [vmem:[%s1345_s0 + $0x64] sm:$0xf] }
  0x39   :  { %234 = vst [vmem:[#allocation0 + $0xd0] sm:$0xf] %v848_v25  ;;  %v850_v28 = vld [vmem:[%s1345_s0 + $0x60] sm:$0xf]  ;;  %499 = vrot.lane.b32.xlu1 %v498_v26, %s909_s10  ;;  %239 = vst [vmem:[#allocation0 + $0xc8] sm:$0xf] %v849_v27 }
  0x3a   :  { %v529_v29 = vld [vmem:[#allocation0 + $0x1c3] ss:$8 sm:$0xf0]   ;;  %244 = vst [vmem:[#allocation0 + $0xc0] sm:$0xf] %v850_v28  ;;  %s910_s0 = smov 32  }
  0x3b   :  { %v548_v30 = vld [vmem:[#allocation0 + $0x102] ss:$8 sm:$0xf]   ;;  %v527_v31 = vld [vmem:[#allocation0 + $0x1c3] ss:$8 sm:$0xf]  }
  0x3c   :  { %v550_v32 = vld [vmem:[#allocation0 + $0x102] ss:$8 sm:$0xf0]   ;;  %v531_v33 = vsel %vm363_vm0, %v529_v29, %v527_v31  ;;  %v636_v56 = vld [vmem:[#allocation0 + $0x1] ss:$8 sm:$0xf]  }
  0x3d   :  { %532 = vrot.lane.b32.xlu0 %v531_v33, %s909_s10  ;;  %v552_v35 = vsel %vm363_vm0, %v550_v32, %v548_v30  ;;  %v538_v36 = vld [vmem:[#allocation0 + $0x2] ss:$8 sm:$0xf]   ;;  %v638_v57 = vld [vmem:[#allocation0 + $0x1] ss:$8 sm:$0xf0]  }
  0x3e   :  { %v518_v34 = vld [vmem:[#allocation0 + $0xc3] ss:$8 sm:$0xf0]   ;;  %v570_v37 = vld [vmem:[#allocation0 + $0x42] ss:$8 sm:$0xf]   ;;  %v640_v0 = vsel %vm363_vm0, %v638_v57, %v636_v56 }
  0x3f   :  { %v572_v38 = vld [vmem:[#allocation0 + $0x42] ss:$8 sm:$0xf0]   ;;  %v657_v60 = vld [vmem:[#allocation0 + $0x201] ss:$8 sm:$0xf]  }
  0x40   :  { %v540_v40 = vld [vmem:[#allocation0 + $0x2] ss:$8 sm:$0xf0]   ;;  %v574_v42 = vsel %vm363_vm0, %v572_v38, %v570_v37  ;;  %v659_v61 = vld [vmem:[#allocation0 + $0x201] ss:$8 sm:$0xf0]  }
  0x41   :  { %v516_v39 = vld [vmem:[#allocation0 + $0xc3] ss:$8 sm:$0xf]   ;;  %553 = vrot.lane.b32.xlu0 %v552_v35, %s910_s0  ;;  %v542_v43 = vsel %vm363_vm0, %v540_v40, %v538_v36  ;;  %v592_v44 = vld [vmem:[#allocation0 + $0x82] ss:$8 sm:$0xf]   ;;  %v661_v18 = vsel %vm363_vm0, %v659_v61, %v657_v60 }
  0x42   :  { %v520_v41 = vsel %vm363_vm0, %v518_v34, %v516_v39  ;;  %v594_v45 = vld [vmem:[#allocation0 + $0x82] ss:$8 sm:$0xf0]   ;;  %v361_v62 = vld [vmem:[#allocation0] ss:$8 sm:$0xf]  }
  0x43   :  { %521 = vrot.lane.b32.xlu1 %v520_v41, %s909_s10  ;;  %v559_v46 = vld [vmem:[#allocation0 + $0x202] ss:$8 sm:$0xf]   ;;  %v596_v48 = vsel %vm363_vm0, %v594_v45, %v592_v44  ;;  %v362_v63 = vld [vmem:[#allocation0] ss:$8 sm:$0xf0]  }
  0x44   :  { %v561_v47 = vld [vmem:[#allocation0 + $0x202] ss:$8 sm:$0xf0]   ;;  %v364_v3 = vsel %vm363_vm0, %v362_v63, %v361_v62  ;;  %v395_v4 = vld [vmem:[#allocation0 + $0x100] ss:$8 sm:$0xf]  }
  0x45   :  { %575 = vrot.lane.b32.xlu0 %v574_v42, %s910_s0  ;;  %v563_v49 = vsel %vm363_vm0, %v561_v47, %v559_v46  ;;  %v614_v50 = vld [vmem:[#allocation0 + $0xc2] ss:$8 sm:$0xf]   ;;  %v397_v5 = vld [vmem:[#allocation0 + $0x100] ss:$8 sm:$0xf0]  }
  0x46   :  { %v616_v51 = vld [vmem:[#allocation0 + $0xc2] ss:$8 sm:$0xf0]   ;;  %366 = vst.msk [vmem:[%s1346_s1] sm:$0xff] %vm365_vm1, %v364_v3   ;;  %v399_v7 = vsel %vm363_vm0, %v397_v5, %v395_v4 }
  0x47   :  { %543 = vrot.lane.b32.xlu1 %v542_v43, %s910_s0  ;;  %v581_v52 = vld [vmem:[#allocation0 + $0x142] ss:$8 sm:$0xf]   ;;  %v618_v54 = vsel %vm363_vm0, %v616_v51, %v614_v50  ;;  %v431_v8 = vld [vmem:[#allocation0 + $0x200] ss:$8 sm:$0xf]  }
  0x48   :  { %v583_v53 = vld [vmem:[#allocation0 + $0x142] ss:$8 sm:$0xf0]   ;;  %v433_v9 = vld [vmem:[#allocation0 + $0x200] ss:$8 sm:$0xf0]  }
  0x49   :  { %597 = vrot.lane.b32.xlu0 %v596_v48, %s910_s0  ;;  %v585_v55 = vsel %vm363_vm0, %v583_v53, %v581_v52  ;;  %v603_v58 = vld [vmem:[#allocation0 + $0x182] ss:$8 sm:$0xf]   ;;  %877 = vst.msk [vmem:[%s1346_s1 + $0x20] sm:$0xff] %vm365_vm1, %v399_v7   ;;  %v435_v10 = vsel %vm363_vm0, %v433_v9, %v431_v8 }
  0x4a   :  { %v605_v59 = vld [vmem:[#allocation0 + $0x182] ss:$8 sm:$0xf0]   ;;  %v404_v11 = vld [vmem:[#allocation0 + $0x140] ss:$8 sm:$0xf]  }
  0x4b   :  { %564 = vrot.lane.b32.xlu1 %v563_v49, %s910_s0  ;;  %v625_v1 = vld [vmem:[#allocation0 + $0x1c2] ss:$8 sm:$0xf]   ;;  %v607_v6 = vsel %vm363_vm0, %v605_v59, %v603_v58  ;;  %v406_v12 = vld [vmem:[#allocation0 + $0x140] ss:$8 sm:$0xf0]  }
  0x4c   :  { %v627_v2 = vld [vmem:[#allocation0 + $0x1c2] ss:$8 sm:$0xf0]   ;;  %v679_v13 = vld [vmem:[#allocation0 + $0x141] ss:$8 sm:$0xf]   ;;  %v408_v15 = vsel %vm363_vm0, %v406_v12, %v404_v11 }
  0x4d   :  { %619 = vrot.lane.b32.xlu0 %v618_v54, %s910_s0  ;;  %v681_v14 = vld [vmem:[#allocation0 + $0x141] ss:$8 sm:$0xf0]   ;;  %881 = vst.msk [vmem:[%s1346_s1 + $0x40] sm:$0xff] %vm365_vm1, %v435_v10   ;;  %878 = vst.msk [vmem:[%s1346_s1 + $0x28] sm:$0xff] %vm365_vm1, %v408_v15   ;;  %v629_v24 = vsel %vm363_vm0, %v627_v2, %v625_v1 }
  0x4e   :  { %v368_v16 = vld [vmem:[#allocation0 + $0x40] ss:$8 sm:$0xf]   ;;  %v646_v19 = vld [vmem:[#allocation0 + $0x101] ss:$8 sm:$0xf]   ;;  %v683_v34 = vsel %vm363_vm0, %v681_v14, %v679_v13 }
  0x4f   :  { %586 = vrot.lane.b32.xlu1 %v585_v55, %s910_s0  ;;  %v370_v17 = vld [vmem:[#allocation0 + $0x40] ss:$8 sm:$0xf0]   ;;  %v648_v20 = vld [vmem:[#allocation0 + $0x101] ss:$8 sm:$0xf0]  }
  0x50   :  { %v372_v21 = vsel %vm363_vm0, %v370_v17, %v368_v16  ;;  %v413_v22 = vld [vmem:[#allocation0 + $0x180] ss:$8 sm:$0xf]   ;;  %v650_v36 = vsel %vm363_vm0, %v648_v20, %v646_v19  ;;  %v701_v37 = vld [vmem:[#allocation0 + $0x181] ss:$8 sm:$0xf]  }
  0x51   :  { %641 = vrot.lane.b32.xlu0 %v640_v0, %s911_s12  ;;  %v415_v23 = vld [vmem:[#allocation0 + $0x180] ss:$8 sm:$0xf0]   ;;  %874 = vst.msk [vmem:[%s1346_s1 + $0x8] sm:$0xff] %vm365_vm1, %v372_v21  }
  0x52   :  { %v417_v25 = vsel %vm363_vm0, %v415_v23, %v413_v22  ;;  %v377_v26 = vld [vmem:[#allocation0 + $0x80] ss:$8 sm:$0xf]   ;;  %v703_v38 = vld [vmem:[#allocation0 + $0x181] ss:$8 sm:$0xf0]  }
  0x53   :  { %608 = vrot.lane.b32.xlu1 %v607_v6, %s910_s0  ;;  %v379_v27 = vld [vmem:[#allocation0 + $0x80] ss:$8 sm:$0xf0]   ;;  %879 = vst.msk [vmem:[%s1346_s1 + $0x30] sm:$0xff] %vm365_vm1, %v417_v25   ;;  %v705_v41 = vsel %vm363_vm0, %v703_v38, %v701_v37 }
  0x54   :  { %v381_v28 = vsel %vm363_vm0, %v379_v27, %v377_v26  ;;  %v422_v29 = vld [vmem:[#allocation0 + $0x1c0] ss:$8 sm:$0xf]   ;;  %v668_v39 = vld [vmem:[#allocation0 + $0x41] ss:$8 sm:$0xf]  }
  0x55   :  { %v424_v30 = vld [vmem:[#allocation0 + $0x1c0] ss:$8 sm:$0xf0]   ;;  %662 = vrot.lane.b32.xlu0 %v661_v18, %s911_s12  ;;  %875 = vst.msk [vmem:[%s1346_s1 + $0x10] sm:$0xff] %vm365_vm1, %v381_v28  }
  0x56   :  { %v426_v31 = vsel %vm363_vm0, %v424_v30, %v422_v29  ;;  %v386_v32 = vld [vmem:[#allocation0 + $0xc0] ss:$8 sm:$0xf]   ;;  %v670_v40 = vld [vmem:[#allocation0 + $0x41] ss:$8 sm:$0xf0]  }
  0x57   :  { %v388_v33 = vld [vmem:[#allocation0 + $0xc0] ss:$8 sm:$0xf0]   ;;  %630 = vrot.lane.b32.xlu1 %v629_v24, %s910_s0  ;;  %880 = vst.msk [vmem:[%s1346_s1 + $0x38] sm:$0xff] %vm365_vm1, %v426_v31   ;;  %v672_v42 = vsel %vm363_vm0, %v670_v40, %v668_v39 }
  0x58   :  { %v390_v35 = vsel %vm363_vm0, %v388_v33, %v386_v32  ;;  %v723_v43 = vld [vmem:[#allocation0 + $0x1c1] ss:$8 sm:$0xf]  }
  0x59   :  { %876 = vst.msk [vmem:[%s1346_s1 + $0x18] sm:$0xff] %vm365_vm1, %v390_v35   ;;  %684 = vrot.lane.b32.xlu0 %v683_v34, %s911_s12  ;;  %v725_v44 = vld [vmem:[#allocation0 + $0x1c1] ss:$8 sm:$0xf0]  }
  0x5a   :  { %v690_v45 = vld [vmem:[#allocation0 + $0x81] ss:$8 sm:$0xf]   ;;  %v727_v47 = vsel %vm363_vm0, %v725_v44, %v723_v43 }
  0x5b   :  { %651 = vrot.lane.b32.xlu1 %v650_v36, %s911_s12  ;;  %v692_v46 = vld [vmem:[#allocation0 + $0x81] ss:$8 sm:$0xf0]  }
  0x5c   :  { %v694_v48 = vsel %vm363_vm0, %v692_v46, %v690_v45  ;;  %v712_v49 = vld [vmem:[#allocation0 + $0xc1] ss:$8 sm:$0xf]  }
  0x5d   :  { %706 = vrot.lane.b32.xlu0 %v705_v41, %s911_s12  ;;  %v714_v50 = vld [vmem:[#allocation0 + $0xc1] ss:$8 sm:$0xf0]  }
  0x5e   :  { %v716_v51 = vsel %vm363_vm0, %v714_v50, %v712_v49 }
  0x5f   :  { %673 = vrot.lane.b32.xlu1 %v672_v42, %s911_s12 }
  0x61   :  { %728 = vrot.lane.b32.xlu0 %v727_v47, %s911_s12 }
  0x63   :  { %695 = vrot.lane.b32.xlu1 %v694_v48, %s911_s12 }
  0x67   :  { %717 = vrot.lane.b32.xlu1 %v716_v51, %s911_s12 }
  0x87   :  { %v446_v52 = vpop.permute.xlu0 %445  }
  0x88   :  { %448 = vst.msk [vmem:[%s1346_s1] sm:$0xff] %vm447_vm2, %v446_v52  }
  0x8c   :  { %v456_v53 = vpop.permute.xlu0 %455  }
  0x8d   :  { %882 = vst.msk [vmem:[%s1346_s1 + $0x20] sm:$0xff] %vm447_vm2, %v456_v53  }
  0x90   :  { %v467_v54 = vpop.permute.xlu1 %466  }
  0x91   :  { %883 = vst.msk [vmem:[%s1346_s1 + $0x40] sm:$0xff] %vm447_vm2, %v467_v54  }
  0x97   :  { %v489_v55 = vpop.permute.xlu0 %488  }
  0x98   :  { %885 = vst.msk [vmem:[%s1346_s1 + $0x28] sm:$0xff] %vm447_vm2, %v489_v55  }
  0xa0   :  { %v478_v56 = vpop.permute.xlu1 %477  }
  0xa1   :  { %884 = vst.msk [vmem:[%s1346_s1 + $0x8] sm:$0xff] %vm447_vm2, %v478_v56  }
  0xa6   :  { %v511_v57 = vpop.permute.xlu0 %510  }
  0xa7   :  { %887 = vst.msk [vmem:[%s1346_s1 + $0x30] sm:$0xff] %vm447_vm2, %v511_v57  }
  0xab   :  { %v500_v58 = vpop.permute.xlu1 %499  }
  0xac   :  { %886 = vst.msk [vmem:[%s1346_s1 + $0x10] sm:$0xff] %vm447_vm2, %v500_v58  }
  0xaf   :  { %v533_v59 = vpop.permute.xlu0 %532  }
  0xb0   :  { %889 = vst.msk [vmem:[%s1346_s1 + $0x38] sm:$0xff] %vm447_vm2, %v533_v59  }
  0xb3   :  { %v554_v60 = vpop.permute.xlu0 %553  }
  0xb4   :  { %890 = vst.msk [vmem:[%s1346_s1 + $0x20] sm:$0xff] %vm545_vm3, %v554_v60  }
  0xb5   :  { %v522_v61 = vpop.permute.xlu1 %521  }
  0xb6   :  { %888 = vst.msk [vmem:[%s1346_s1 + $0x18] sm:$0xff] %vm447_vm2, %v522_v61  }
  0xb7   :  { %v576_v62 = vpop.permute.xlu0 %575  }
  0xb8   :  { %892 = vst.msk [vmem:[%s1346_s1 + $0x8] sm:$0xff] %vm545_vm3, %v576_v62  }
  0xb9   :  { %v544_v63 = vpop.permute.xlu1 %543  }
  0xba   :  { %546 = vst.msk [vmem:[%s1346_s1] sm:$0xff] %vm545_vm3, %v544_v63  }
  0xbb   :  { %v598_v0 = vpop.permute.xlu0 %597  }
  0xbc   :  { %894 = vst.msk [vmem:[%s1346_s1 + $0x10] sm:$0xff] %vm545_vm3, %v598_v0  }
  0xbd   :  { %v565_v1 = vpop.permute.xlu1 %564  }
  0xbe   :  { %891 = vst.msk [vmem:[%s1346_s1 + $0x40] sm:$0xff] %vm545_vm3, %v565_v1  }
  0xbf   :  { %v620_v2 = vpop.permute.xlu0 %619  }
  0xc0   :  { %896 = vst.msk [vmem:[%s1346_s1 + $0x18] sm:$0xff] %vm545_vm3, %v620_v2  }
  0xc1   :  { %v587_v3 = vpop.permute.xlu1 %586  }
  0xc2   :  { %893 = vst.msk [vmem:[%s1346_s1 + $0x28] sm:$0xff] %vm545_vm3, %v587_v3  }
  0xc3   :  { %v642_v4 = vpop.permute.xlu0 %641  }
  0xc4   :  { %644 = vst.msk [vmem:[%s1346_s1] sm:$0xff] %vm643_vm4, %v642_v4  }
  0xc5   :  { %v609_v5 = vpop.permute.xlu1 %608  }
  0xc6   :  { %895 = vst.msk [vmem:[%s1346_s1 + $0x30] sm:$0xff] %vm545_vm3, %v609_v5  }
  0xc7   :  { %v663_v6 = vpop.permute.xlu0 %662  }
  0xc8   :  { %899 = vst.msk [vmem:[%s1346_s1 + $0x40] sm:$0xff] %vm643_vm4, %v663_v6  }
  0xc9   :  { %v631_v7 = vpop.permute.xlu1 %630  }
  0xca   :  { %897 = vst.msk [vmem:[%s1346_s1 + $0x38] sm:$0xff] %vm545_vm3, %v631_v7  }
  0xcb   :  { %v685_v8 = vpop.permute.xlu0 %684  }
  0xcc   :  { %901 = vst.msk [vmem:[%s1346_s1 + $0x28] sm:$0xff] %vm643_vm4, %v685_v8  }
  0xcd   :  { %v652_v9 = vpop.permute.xlu1 %651  }
  0xce   :  { %898 = vst.msk [vmem:[%s1346_s1 + $0x20] sm:$0xff] %vm643_vm4, %v652_v9  }
  0xcf   :  { %v707_v10 = vpop.permute.xlu0 %706  }
  0xd0   :  { %903 = vst.msk [vmem:[%s1346_s1 + $0x30] sm:$0xff] %vm643_vm4, %v707_v10  }
  0xd1   :  { %v674_v11 = vpop.permute.xlu1 %673  }
  0xd2   :  { %900 = vst.msk [vmem:[%s1346_s1 + $0x8] sm:$0xff] %vm643_vm4, %v674_v11  }
  0xd3   :  { %v729_v12 = vpop.permute.xlu0 %728  }
  0xd4   :  { %905 = vst.msk [vmem:[%s1346_s1 + $0x38] sm:$0xff] %vm643_vm4, %v729_v12  }
  0xd5   :  { %v696_v13 = vpop.permute.xlu1 %695  }
  0xd6   :  { %902 = vst.msk [vmem:[%s1346_s1 + $0x10] sm:$0xff] %vm643_vm4, %v696_v13  }
  0xd9   :  { %v718_v14 = vpop.permute.xlu1 %717  }
  0xda   :  { %904 = vst.msk [vmem:[%s1346_s1 + $0x18] sm:$0xff] %vm643_vm4, %v718_v14  }

// kernel: synthesis_block_forward.2
= control target key start
LH: loop header
LB: loop body
LE: loop exit
PB: predicated region body
PF: predicated region fallthrough
CT: control target
= control target key end

     0   :  { %s695_s15 = smov 0   ;;  %s811_s0 = inlined_call_operand.vmem [shape: f32[2,8,82], index: 0, kind: input, shape index: {}]   ;;  %s812_s1 = inlined_call_operand.vmem [shape: bf16[2,64,72], index: 1, kind: input, shape index: {}]   ;;  %s813_s2 = inlined_call_operand.vmem [shape: f32[9,64], index: 2, kind: input, shape index: {}]   ;;  %s814_s3 = inlined_call_operand.vmem [shape: f32[64,64], index: 3, kind: input, shape index: {}]   ;;  %s815_s4 = inlined_call_operand.vmem [shape: f32[2,64,64], index: 4, kind: output, shape index: {}]  }
   0x1 LB: > { %s550_s16 = sadd.s32 4294967295, %s653_s15   ;;  %p554_p0 = scmp.ge.s32.totalorder %s653_s15, 1  ;;  %s653_s15 = sphi %s695_s15, %s14_s15  }
   0x2   : > { %p171_p1 = scmp.lt.s32.totalorder %s653_s15, 3 }
   0x4   : > { %p172_p2 = pnand %p554_p0, %p171_p1 }
   0x5   : > { %s655_s19 = smov (!%p172_p2), 18   ;;  %s656_s22 = smov (!%p172_p2), 17  }
   0x6   : > { %175 = sbr.rel (%p172_p2) target bundleno = 478 (0x1de), region = 36  ;;  %s657_s23 = smov (!%p172_p2), 16  }
   0x7   : > { %s658_s24 = smov (!%p172_p2), 10   ;;  %s659_s25 = smov (!%p172_p2), 2  }
   0x8   : > { %s660_s26 = smov (!%p172_p2), 8   ;;  %s661_s27 = smov (!%p172_p2), 1  }
   0x9   : > { %p201_p3 = scmp.lt.s32.totalorder (!%p172_p2), %s550_s16, 1  ;;  %s662_s6 = smov (!%p172_p2), 110  }
   0xa   : > { %s663_s7 = smov (!%p172_p2), 111   ;;  %s664_s8 = smov (!%p172_p2), 112  }
   0xb   : > { %v560_v0 = vld [vmem:[%s813_s2 + $0x8] ss:$0 sm:$0xff]  ;;  %v235_v1 = vlaneseq  ;;  %v711_v3 = vld [vmem:[%s813_s2] sm:$0xff]  ;;  %s817_s16 = smov (!%p201_p3, %s550_s16), 1  ;;  %vm360_vm0 = vcmask 588800   ;;  %s665_s13 = smov 119  }
   0xc   : > { %299 = vrot.lane.b32.xlu0 %v560_v0, %s655_s19  ;;  %s555_s28 = sshll.u32 %s817_s16, 3  ;;  %s579_s9 = sshll.u32 %s817_s16, 5  ;;  %vm373_vm1 = vcmask 1043456   ;;  %v229_v52 = vld [vmem:[%s814_s3 + $0x10] sm:$0xff]  ;;  %v227_v56 = vld [vmem:[%s814_s3] sm:$0xff]  ;;  %vm474_vm2 = vcmask 523264  }
   0xd   : > { %v706_v2 = vshrl.u32 %v235_v1, 7  ;;  %s204_s5 = scalar_lea.vmem %s811_s0, %s555_s28  ;;  %s744_s12 = scalar_lea.vmem %s812_s1, %s579_s9  ;;  %v233_v53 = vld [vmem:[%s814_s3 + $0x30] sm:$0xff]  ;;  %v231_v57 = vld [vmem:[%s814_s3 + $0x20] sm:$0xff] }
   0xe   : > { %v735_v16 = vld [vmem:[%s204_s5] sm:$0xff]  ;;  %v644_v27 = vld [vmem:[%s744_s12 + $0x10] sm:$0xff]   ;;  %s666_s14 = smov 118   ;;  %s667_s17 = smov 120   ;;  %v645_v50 = vld [vmem:[%s744_s12 + $0x8] sm:$0xff]  }
   0xf   : > { %v287_v4 = vsub.s32 7, %v706_v2  ;;  %v278_v5 = vsub.s32 6, %v706_v2  ;;  %v269_v6 = vsub.s32 5, %v706_v2  ;;  %v251_v7 = vsub.s32 2, %v706_v2  ;;  %v643_v26 = vld [vmem:[%s744_s12] sm:$0xff]   ;;  %604 = vmatprep.mubr.msk.bf16.mxu1 %vm360_vm0, %v644_v27  ;;  %s668_s18 = smov 126  }
  0x10   : > { %v260_v11 = vsub.s32 3, %v706_v2  ;;  %v242_v13 = vsub.s32 1, %v706_v2  ;;  %600 = vmatprep.mubr.msk.bf16.mxu0 %vm360_vm0, %v643_v26  ;;  %s669_s19 = smov 127   ;;  %v237_v39 = vsub.s32 0, %v706_v2  ;;  %v646_v51 = vld [vmem:[%s744_s12 + $0x18] sm:$0xff]   ;;  %s580_s28 = sshll.u32 %s817_s16, 6 }
  0x11   : > { %v288_v8 = vrot.slane %v711_v3, %v287_v4  ;;  %v279_v9 = vrot.slane %v711_v3, %v278_v5  ;;  %v270_v10 = vrot.slane %v711_v3, %v269_v6  ;;  %v252_v12 = vrot.slane %v711_v3, %v251_v7  ;;  %v230_v2 = vld [vmem:[%s814_s3 + $0x18] sm:$0xff]  ;;  %s790_s12 = scalar_lea.vmem %s815_s4, %s580_s28 }
  0x12   : > { %v261_v14 = vrot.slane %v711_v3, %v260_v11  ;;  %v243_v15 = vrot.slane %v711_v3, %v242_v13  ;;  %v238_v43 = vrot.slane %v711_v3, %v237_v39  ;;  %v234_v3 = vld [vmem:[%s814_s3 + $0x38] sm:$0xff]  ;;  %v232_v11 = vld [vmem:[%s814_s3 + $0x28] sm:$0xff] }
  0x13   : > { %290 = vrot.lane.b32.xlu1 %v288_v8, %s656_s22  ;;  %281 = vrot.lane.b32.xlu0 %v279_v9, %s657_s23 }
  0x14   : > { %v239_v47 = vmul.f32 %v238_v43, %v735_v16 }
  0x17   : > { %272 = vrot.lane.b32.xlu1 %v270_v10, %s658_s24  ;;  %254 = vrot.lane.b32.xlu0 %v252_v12, %s659_s25  ;;  %v228_v10 = vld [vmem:[%s814_s3 + $0x8] sm:$0xff] }
  0x1b   : > { %263 = vrot.lane.b32.xlu1 %v261_v14, %s660_s26  ;;  %245 = vrot.lane.b32.xlu0 %v243_v15, %s661_s27 }
  0x7e   : > { %v300_v17 = vpop.permute.xlu0 %299 }
  0x7f   : > { %v302_v18 = vmul.f32 %v300_v17, %v735_v16 }
  0x81   : > { %332 = vrot.lane.b32.xlu1 %v302_v18, %s662_s6 }
  0x85   : > { %v291_v19 = vpop.permute.xlu1 %290  ;;  %v282_v20 = vpop.permute.xlu0 %281 }
  0x86   : > { %v293_v21 = vmul.f32 %v291_v19, %v735_v16  ;;  %v284_v22 = vmul.f32 %v282_v20, %v735_v16 }
  0x88   : > { %328 = vrot.lane.b32.xlu1 %v293_v21, %s663_s7  ;;  %324 = vrot.lane.b32.xlu0 %v284_v22, %s664_s8 }
  0x89   : > { %v273_v23 = vpop.permute.xlu1 %272  ;;  %v255_v24 = vpop.permute.xlu0 %254 }
  0x8a   : > { %v275_v25 = vmul.f32 %v273_v23, %v735_v16  ;;  %v257_v28 = vmul.f32 %v255_v24, %v735_v16 }
  0x8c   : > { %316 = vrot.lane.b32.xlu0 %v735_v16, %s665_s13  ;;  %320 = vrot.lane.b32.xlu1 %v275_v25, %s666_s14 }
  0x8d   : > { %v264_v29 = vpop.permute.xlu1 %263  ;;  %v246_v30 = vpop.permute.xlu0 %245 }
  0x8e   : > { %v266_v31 = vmul.f32 %v264_v29, %v735_v16  ;;  %v248_v32 = vmul.f32 %v246_v30, %v735_v16 }
  0x90   : > { %312 = vrot.lane.b32.xlu1 %v266_v31, %s667_s17  ;;  %308 = vrot.lane.b32.xlu0 %v257_v28, %s668_s18 }
  0x94   : > { %304 = vrot.lane.b32.xlu0 %v248_v32, %s669_s19 }
  0xf3   : > { %v333_v33 = vpop.permute.xlu1 %332 }
  0xf4   : > { %v339_v34 = vpack.c.bf16 %v333_v33, %v333_v33 }
  0xf6   : > { %618 = vmatprep.subr.msk.bf16.mxu0 %vm373_vm1, %v339_v34  ;;  %619 = vmatprep.subr.msk.bf16.mxu1 %vm373_vm1, %v339_v34  ;;  %v375_v35 = vsel %vm373_vm1, %v339_v34, 0 }
  0xf7   : > { %591 = vmatpush3.bf16.msra.mxu0 %v375_v35  ;;  %613 = vmatpush3.bf16.msra.mxu1 %v375_v35 }
  0xfa   : > { %v329_v36 = vpop.permute.xlu1 %328  ;;  %v325_v37 = vpop.permute.xlu0 %324 }
  0xfb   : > { %v338_v38 = vpack.c.bf16 %v329_v36, %v325_v37 }
  0xfd   : > { %592 = vmatprep.subr.bf16.mxu0 %v338_v38  ;;  %609 = vmatprep.subr.bf16.mxu1 %v338_v38 }
  0xfe   : > { %593 = vmatpush3.bf16.msra.mxu0 %v338_v38  ;;  %614 = vmatpush3.bf16.msra.mxu1 %v338_v38  ;;  %v317_v40 = vpop.permute.xlu0 %316  ;;  %v321_v41 = vpop.permute.xlu1 %320 }
  0xff   : > { %v337_v42 = vpack.c.bf16 %v321_v41, %v317_v40 }
 0x101   : > { %594 = vmatprep.subr.bf16.mxu0 %v337_v42  ;;  %610 = vmatprep.subr.bf16.mxu1 %v337_v42 }
 0x102   : > { %595 = vmatpush3.bf16.msra.mxu0 %v337_v42  ;;  %615 = vmatpush3.bf16.msra.mxu1 %v337_v42  ;;  %v313_v44 = vpop.permute.xlu1 %312  ;;  %v309_v45 = vpop.permute.xlu0 %308 }
 0x103   : > { %v336_v46 = vpack.c.bf16 %v313_v44, %v309_v45 }
 0x105   : > { %596 = vmatprep.subr.bf16.mxu0 %v336_v46  ;;  %611 = vmatprep.subr.bf16.mxu1 %v336_v46 }
 0x106   : > { %597 = vmatpush3.bf16.msra.mxu0 %v336_v46  ;;  %616 = vmatpush3.bf16.msra.mxu1 %v336_v46  ;;  %v305_v48 = vpop.permute.xlu0 %304 }
 0x107   : > { %v335_v49 = vpack.c.bf16 %v305_v48, %v239_v47 }
 0x109   : > { %598 = vmatprep.subr.bf16.mxu0 %v335_v49  ;;  %612 = vmatprep.subr.bf16.mxu1 %v335_v49 }
 0x10a   : > { %599 = vmatpush3.bf16.msra.mxu0 %v335_v49  ;;  %617 = vmatpush3.bf16.msra.mxu1 %v335_v49 }
 0x10d   : > { %601 = vmatmul.mubr.msk.bf16.vlgmr.msra.gmra.mxu0 %vm360_vm0, %v645_v50  ;;  %605 = vmatmul.mubr.msk.bf16.vlgmr.msra.gmra.mxu1 %vm360_vm0, %v646_v51 }
 0x1cd   : > { %v602_v54 = vpop.f32.mrf.mxu0  ;;  %v606_v55 = vpop.f32.mrf.mxu1 }
 0x1ce   : > { %v420_v58 = vadd.f32 %v602_v54, %v229_v52  ;;  %v436_v59 = vadd.f32 %v606_v55, %v233_v53 }
 0x1cf   : > { %v411_v60 = vpop.f32.mrf.mxu0  ;;  %v427_v61 = vpop.f32.mrf.mxu1 }
 0x1d0   : > { %v444_v62 = vmul.f32 0.2, %v420_v58  ;;  %v448_v63 = vmul.f32 0.2, %v436_v59  ;;  %v412_v0 = vadd.f32 %v411_v60, %v227_v56  ;;  %v428_v1 = vadd.f32 %v427_v61, %v231_v57 }
 0x1d1   : > { %v603_v4 = vpop.f32.mrf.mxu0  ;;  %v607_v5 = vpop.f32.mrf.mxu1 }
 0x1d2   : > { %v452_v6 = vmax.f32 %v420_v58, %v444_v62  ;;  %v456_v7 = vmax.f32 %v436_v59, %v448_v63  ;;  %v442_v8 = vmul.f32 0.2, %v412_v0  ;;  %v446_v9 = vmul.f32 0.2, %v428_v1 }
 0x1d3   : > { %v423_v12 = vadd.f32 %v603_v4, %v230_v2  ;;  %v439_v13 = vadd.f32 %v607_v5, %v234_v3  ;;  %v414_v14 = vpop.f32.mrf.mxu0  ;;  %v430_v15 = vpop.f32.mrf.mxu1 }
 0x1d4   : > { %v571_v16 = vclamps-f32 %v452_v6, 256.0  ;;  %v575_v17 = vclamps-f32 %v456_v7, 256.0  ;;  %v450_v18 = vmax.f32 %v412_v0, %v442_v8  ;;  %v454_v19 = vmax.f32 %v428_v1, %v446_v9 }
 0x1d5   : > { %v445_v20 = vmul.f32 0.2, %v423_v12  ;;  %v449_v21 = vmul.f32 0.2, %v439_v13  ;;  %v415_v22 = vadd.f32 %v414_v14, %v228_v10  ;;  %v431_v23 = vadd.f32 %v430_v15, %v232_v11 }
 0x1d6   : > { %477 = vst.msk [vmem:[%s790_s12 + $0x10] sm:$0xff] %vm474_vm2, %v571_v16  ;;  %481 = vst.msk [vmem:[%s790_s12 + $0x30] sm:$0xff] %vm474_vm2, %v575_v17  ;;  %v569_v24 = vclamps-f32 %v450_v18, 256.0  ;;  %v573_v25 = vclamps-f32 %v454_v19, 256.0 }
 0x1d7   : > { %v453_v26 = vmax.f32 %v423_v12, %v445_v20  ;;  %v457_v27 = vmax.f32 %v439_v13, %v449_v21  ;;  %v443_v28 = vmul.f32 0.2, %v415_v22  ;;  %v447_v29 = vmul.f32 0.2, %v431_v23 }
 0x1d8   : > { %475 = vst.msk [vmem:[%s790_s12] sm:$0xff] %vm474_vm2, %v569_v24  ;;  %479 = vst.msk [vmem:[%s790_s12 + $0x20] sm:$0xff] %vm474_vm2, %v573_v25 }
 0x1d9   : > { %v572_v30 = vclamps-f32 %v453_v26, 256.0  ;;  %v576_v31 = vclamps-f32 %v457_v27, 256.0  ;;  %v451_v32 = vmax.f32 %v415_v22, %v443_v28  ;;  %v455_v33 = vmax.f32 %v431_v23, %v447_v29 }
 0x1db   : > { %478 = vst.msk [vmem:[%s790_s12 + $0x18] sm:$0xff] %vm474_vm2, %v572_v30  ;;  %482 = vst.msk [vmem:[%s790_s12 + $0x38] sm:$0xff] %vm474_vm2, %v576_v31  ;;  %v570_v34 = vclamps-f32 %v451_v32, 256.0  ;;  %v574_v35 = vclamps-f32 %v455_v33, 256.0 }
 0x1dd   : > { %476 = vst.msk [vmem:[%s790_s12 + $0x8] sm:$0xff] %vm474_vm2, %v570_v34  ;;  %480 = vst.msk [vmem:[%s790_s12 + $0x28] sm:$0xff] %vm474_vm2, %v574_v35 }
 0x1de PF: > { %s14_s15 = sadd.s32 1, %s653_s15  }
 0x1df   : > { %p11_p4 = scmp.ge.s32.totalorder %s14_s15, 4  }
 0x1e1   :  { %13 = sbr.rel (!%p11_p4) target bundleno = 1 (0x1), region = 69 }

// kernel: synthesis_block_forward.3
= control target key start
LH: loop header
LB: loop body
LE: loop exit
PB: predicated region body
PF: predicated region fallthrough
CT: control target
= control target key end

     0   :  { %s1363_s27 = smov 0   ;;  %s1576_s0 = inlined_call_operand.vmem [shape: f32[2,16,290], index: 0, kind: input, shape index: {}]   ;;  %s1577_s1 = inlined_call_operand.vmem [shape: bf16[2,16,144], index: 1, kind: input, shape index: {}]   ;;  %s1578_s2 = inlined_call_operand.vmem [shape: f32[9,256], index: 2, kind: input, shape index: {}]   ;;  %s1579_s3 = inlined_call_operand.vmem [shape: f32[16,256], index: 3, kind: input, shape index: {}]   ;;  %s1580_s4 = inlined_call_operand.vmem [shape: f32[2,3,16], index: 4, kind: input, shape index: {}]   ;;  %s1581_s5 = inlined_call_operand.vmem [shape: f32[3,1], index: 5, kind: input, shape index: {}]   ;;  %s1582_s6 = inlined_call_operand.vmem [shape: f32[2,3,256], index: 6, kind: input, shape index: {}]   ;;  %s1583_s7 = inlined_call_operand.vmem [shape: f32[2,16,256], index: 7, kind: output, shape index: {0}]   ;;  %s1584_s8 = inlined_call_operand.vmem [shape: f32[2,3,256], index: 8, kind: output, shape index: {1}]  }
   0x1 LB: > { %s1109_s28 = sadd.s32 4294967295, %s1299_s27   ;;  %p1113_p0 = scmp.ge.s32.totalorder %s1299_s27, 1  ;;  %s1299_s27 = sphi %s1363_s27, %s19_s27  }
   0x2   : > { %p294_p1 = scmp.lt.s32.totalorder %s1299_s27, 3 }
   0x4   : > { %p295_p2 = pnand %p1113_p0, %p294_p1 }
   0x5   : > { %s1301_s11 = smov (!%p295_p2), 33   ;;  %s1302_s12 = smov (!%p295_p2), 32  }
   0x6   : > { %298 = sbr.rel (%p295_p2) target bundleno = 724 (0x2d4), region = 48  ;;  %p347_p3 = scmp.lt.s32.totalorder (!%p295_p2), %s1109_s28, 1 }
   0x7   : > { %s1303_s13 = smov (!%p295_p2), 18   ;;  %s1304_s14 = smov (!%p295_p2), 16  }
   0x8   : > { %s1305_s16 = smov (!%p295_p2), 2   ;;  %s1306_s22 = smov (!%p295_p2), 1  }
   0x9   : > { %s1307_s25 = smov (!%p295_p2), 34   ;;  %s1308_s26 = smov (!%p295_p2), 111  }
   0xa   : > { %s1309_s29 = smov (!%p295_p2), 95   ;;  %s1310_s30 = smov (!%p295_p2), 96  }
   0xb   : > { %v393_v0 = vlaneseq  ;;  %v1376_v2 = vld [vmem:[%s1578_s2] sm:$0xff]  ;;  %v1383_v5 = vld [vmem:[%s1578_s2 + $0x8] sm:$0xff]  ;;  %s1586_s28 = smov (!%p347_p3, %s1109_s28), 1  ;;  %v1125_v22 = vld [vmem:[%s1578_s2 + $0x18] ss:$0 sm:$0xff]  ;;  %vm544_vm0 = vcmask 269312  }
   0xc   : > { %s1142_s15 = smul.u32 48, %s1586_s28  ;;  %v1124_v23 = vld [vmem:[%s1578_s2 + $0x10] ss:$0 sm:$0xff]  ;;  %vm519_vm1 = vcmask 261120   ;;  %vm494_vm2 = vcmask 146432   ;;  %vm469_vm3 = vcmask 130048  }
   0xd   : > { %v1371_v1 = vshrl.u32 %v393_v0, 7  ;;  %s1311_s9 = smov 110   ;;  %vm444_vm4 = vcmask 15360   ;;  %vm419_vm5 = vcmask 7168   ;;  %s1312_s10 = smov 126   ;;  %vm569_vm6 = vcmask 277504  }
   0xe   : > { %s351_s19 = scalar_lea.vmem %s1576_s0, %s1142_s15  ;;  %vm760_vm7 = vcmask 777216   ;;  %vm733_vm8 = vcmask 785408   ;;  %vm679_vm9 = vcmask 908288   ;;  %vm706_vm10 = vcmask 900096  }
   0xf   : > { %v532_v3 = vsub.s32 7, %v1371_v1  ;;  %v507_v4 = vsub.s32 6, %v1371_v1  ;;  %v482_v10 = vsub.s32 5, %v1371_v1  ;;  %v457_v13 = vsub.s32 3, %v1371_v1  ;;  %v1417_v24 = vld [vmem:[%s351_s19 + $0x8] sm:$0xff]  ;;  %v1419_v25 = vld [vmem:[%s351_s19 + $0x10] sm:$0xff] }
  0x10   : > { %v432_v15 = vsub.s32 2, %v1371_v1  ;;  %v407_v19 = vsub.s32 1, %v1371_v1  ;;  %v1421_v26 = vld [vmem:[%s351_s19 + $0x20] sm:$0xff]  ;;  %v1423_v27 = vld [vmem:[%s351_s19 + $0x28] sm:$0xff]  ;;  %v1168_v28 = vpack.i.bf16 %v1419_v25, %v1417_v24  ;;  %v1431_v31 = vld [vmem:[%s351_s19 + $0x18] sm:$0xff]  ;;  %vm652_vm11 = vcmask 916480  }
  0x11   : > { %v533_v6 = vrot.slane %v1376_v2, %v532_v3  ;;  %v508_v7 = vrot.slane %v1376_v2, %v507_v4  ;;  %v537_v8 = vrot.slane %v1383_v5, %v532_v3  ;;  %v512_v9 = vrot.slane %v1383_v5, %v507_v4  ;;  %v1429_v30 = vld [vmem:[%s351_s19] sm:$0xff] }
  0x12   : > { %v487_v11 = vrot.slane %v1383_v5, %v482_v10  ;;  %v483_v12 = vrot.slane %v1376_v2, %v482_v10  ;;  %v458_v14 = vrot.slane %v1376_v2, %v457_v13  ;;  %v462_v16 = vrot.slane %v1383_v5, %v457_v13 }
  0x13   : > { %540 = vrot.lane.b32.xlu0 %v533_v6, %s1301_s11  ;;  %515 = vrot.lane.b32.xlu1 %v508_v7, %s1302_s12  ;;  %v433_v17 = vrot.slane %v1376_v2, %v432_v15  ;;  %v437_v18 = vrot.slane %v1383_v5, %v432_v15  ;;  %v412_v20 = vrot.slane %v1383_v5, %v407_v19  ;;  %vm625_vm12 = vcmask 1031168  }
  0x14   : > { %v408_v21 = vrot.slane %v1376_v2, %v407_v19  ;;  %v1173_v29 = vpack.i.bf16 %v1423_v27, %v1421_v26  ;;  %v1178_v32 = vpack.i.bf16 %v1431_v31, %v1429_v30  ;;  %vm598_vm13 = vcmask 1039360  }
  0x15   : > { %vm787_vm14 = vcmask 769024  }
  0x17   : > { %542 = vrot.lane.b32.xlu0 %v537_v8, %s1301_s11  ;;  %517 = vrot.lane.b32.xlu1 %v512_v9, %s1302_s12  ;;  %s1313_s11 = smov 112   ;;  %s1314_s12 = smov 127  }
  0x1b   : > { %492 = vrot.lane.b32.xlu1 %v487_v11, %s1303_s13  ;;  %490 = vrot.lane.b32.xlu0 %v483_v12, %s1303_s13  ;;  %s1315_s13 = smov 94  }
  0x1f   : > { %465 = vrot.lane.b32.xlu0 %v458_v14, %s1304_s14  ;;  %467 = vrot.lane.b32.xlu1 %v462_v16, %s1304_s14  ;;  %s1138_s14 = sshll.u32 %s1586_s28, 4 }
  0x20   : > { %s1494_s17 = scalar_lea.vmem %s1577_s1, %s1138_s14 }
  0x23   : > { %440 = vrot.lane.b32.xlu0 %v433_v17, %s1305_s16  ;;  %442 = vrot.lane.b32.xlu1 %v437_v18, %s1305_s16  ;;  %s1139_s16 = sshll.u32 %s1586_s28, 3 }
  0x24   : > { %s365_s19 = scalar_lea.vmem %s1582_s6, %s1139_s16 }
  0x27   : > { %417 = vrot.lane.b32.xlu1 %v412_v20, %s1306_s22  ;;  %415 = vrot.lane.b32.xlu0 %v408_v21, %s1306_s22  ;;  %s375_s22 = scalar_lea.vmem %s1584_s8, %s1139_s16 }
  0x2b   : > { %567 = vrot.lane.b32.xlu1 %v1125_v22, %s1307_s25  ;;  %565 = vrot.lane.b32.xlu0 %v1124_v23, %s1307_s25 }
  0x2f   : > { %1169 = vrot.lane.b32.xlu1 %v1168_v28, %s1308_s26  ;;  %1174 = vrot.lane.b32.xlu0 %v1173_v29, %s1308_s26 }
  0x33   : > { %1179 = vrot.lane.b32.xlu1 %v1178_v32, %s1308_s26  ;;  %s1140_s26 = sshll.u32 %s1586_s28, 5 }
  0x85   : > { %v541_v33 = vpop.permute.xlu0 %540  ;;  %v516_v34 = vpop.permute.xlu1 %515 }
  0x86   : > { %v549_v35 = vmul.f32 %v541_v33, %v1429_v30  ;;  %v552_v36 = vmul.f32 %v541_v33, %v1431_v31  ;;  %v524_v37 = vmul.f32 %v516_v34, %v1429_v30  ;;  %v527_v38 = vmul.f32 %v516_v34, %v1431_v31 }
  0x88   : > { %v1183_v39 = vpack.i.bf16 %v552_v36, %v549_v35  ;;  %v1188_v40 = vpack.i.bf16 %v527_v38, %v524_v37 }
  0x89   : > { %v543_v41 = vpop.permute.xlu0 %542  ;;  %v518_v42 = vpop.permute.xlu1 %517 }
  0x8a   : > { %v545_v43 = vsel %vm544_vm0, %v541_v33, %v543_v41  ;;  %v554_v44 = vmul.f32 %v543_v41, %v1423_v27  ;;  %v520_v45 = vsel %vm519_vm1, %v516_v34, %v518_v42  ;;  %1184 = vrot.lane.b32.xlu0 %v1183_v39, %s1309_s29  ;;  %v526_v48 = vmul.f32 %v518_v42, %v1419_v25 }
  0x8b   : > { %v553_v46 = vmul.f32 %v545_v43, %v1421_v26  ;;  %v525_v47 = vmul.f32 %v520_v45, %v1417_v24  ;;  %1189 = vrot.lane.b32.xlu1 %v1188_v40, %s1310_s30  ;;  %v551_v56 = vmul.f32 %v543_v41, %v1419_v25  ;;  %v550_v57 = vmul.f32 %v545_v43, %v1417_v24 }
  0x8c   : > { %v528_v0 = vmul.f32 %v520_v45, %v1421_v26  ;;  %v529_v3 = vmul.f32 %v518_v42, %v1423_v27 }
  0x8d   : > { %v493_v49 = vpop.permute.xlu1 %492  ;;  %v491_v50 = vpop.permute.xlu0 %490  ;;  %v1203_v51 = vpack.i.bf16 %v554_v44, %v553_v46  ;;  %v1208_v55 = vpack.i.bf16 %v526_v48, %v525_v47  ;;  %v1198_v4 = vpack.i.bf16 %v551_v56, %v550_v57 }
  0x8e   : > { %v495_v52 = vsel %vm494_vm2, %v491_v50, %v493_v49  ;;  %v499_v53 = vmul.f32 %v491_v50, %v1429_v30  ;;  %v502_v54 = vmul.f32 %v491_v50, %v1431_v31  ;;  %v504_v58 = vmul.f32 %v493_v49, %v1423_v27 }
  0x8f   : > { %1204 = vrot.lane.b32.xlu1 %v1203_v51, %s1309_s29  ;;  %v503_v59 = vmul.f32 %v495_v52, %v1421_v26  ;;  %v501_v15 = vmul.f32 %v493_v49, %v1419_v25  ;;  %v500_v16 = vmul.f32 %v495_v52, %v1417_v24  ;;  %v1213_v17 = vpack.i.bf16 %v529_v3, %v528_v0 }
  0x90   : > { %v1193_v60 = vpack.i.bf16 %v502_v54, %v499_v53 }
  0x91   : > { %v466_v61 = vpop.permute.xlu0 %465  ;;  %v468_v62 = vpop.permute.xlu1 %467  ;;  %v1228_v6 = vpack.i.bf16 %v504_v58, %v503_v59  ;;  %v1218_v32 = vpack.i.bf16 %v501_v15, %v500_v16 }
  0x92   : > { %1194 = vrot.lane.b32.xlu0 %v1193_v60, %s1311_s9  ;;  %v470_v63 = vsel %vm469_vm3, %v466_v61, %v468_v62  ;;  %v479_v12 = vmul.f32 %v468_v62, %v1423_v27  ;;  %v474_v20 = vmul.f32 %v466_v61, %v1429_v30  ;;  %v477_v21 = vmul.f32 %v466_v61, %v1431_v31  ;;  %v1291_v61 = vld [vmem:[%s1494_s17 + $0x4] ss:$8 sps:$4 sm:$0xff]  }
  0x93   : > { %1209 = vrot.lane.b32.xlu1 %v1208_v55, %s1310_s30  ;;  %v478_v11 = vmul.f32 %v470_v63, %v1421_v26  ;;  %v475_v40 = vmul.f32 %v470_v63, %v1417_v24  ;;  %v476_v41 = vmul.f32 %v468_v62, %v1419_v25  ;;  %1128 = vmatprep.mubr.msk.bf16.mxu0 %vm469_vm3, %v1291_v61 }
  0x94   : > { %v1223_v35 = vpack.i.bf16 %v477_v21, %v474_v20 }
  0x95   : > { %v441_v7 = vpop.permute.xlu0 %440  ;;  %v443_v8 = vpop.permute.xlu1 %442  ;;  %v1243_v28 = vpack.i.bf16 %v479_v12, %v478_v11  ;;  %v1238_v47 = vpack.i.bf16 %v476_v41, %v475_v40 }
  0x96   : > { %v449_v9 = vmul.f32 %v441_v7, %v1429_v30  ;;  %v452_v10 = vmul.f32 %v441_v7, %v1431_v31  ;;  %1199 = vrot.lane.b32.xlu0 %v1198_v4, %s1309_s29  ;;  %v445_v14 = vsel %vm444_vm4, %v441_v7, %v443_v8  ;;  %v451_v23 = vmul.f32 %v443_v8, %v1419_v25 }
  0x97   : > { %1229 = vrot.lane.b32.xlu1 %v1228_v6, %s1311_s9  ;;  %v450_v22 = vmul.f32 %v445_v14, %v1417_v24  ;;  %v453_v45 = vmul.f32 %v445_v14, %v1421_v26  ;;  %v454_v46 = vmul.f32 %v443_v8, %v1423_v27 }
  0x98   : > { %v1233_v13 = vpack.i.bf16 %v452_v10, %v449_v9 }
  0x99   : > { %v418_v18 = vpop.permute.xlu1 %417  ;;  %v416_v19 = vpop.permute.xlu0 %415  ;;  %v1248_v36 = vpack.i.bf16 %v451_v23, %v450_v22  ;;  %v1253_v53 = vpack.i.bf16 %v454_v46, %v453_v45 }
  0x9a   : > { %1214 = vrot.lane.b32.xlu0 %v1213_v17, %s1310_s30  ;;  %v420_v29 = vsel %vm419_vm5, %v416_v19, %v418_v18  ;;  %v429_v37 = vmul.f32 %v418_v18, %v1423_v27  ;;  %v426_v48 = vmul.f32 %v418_v18, %v1419_v25  ;;  %v427_v56 = vmul.f32 %v416_v19, %v1431_v31 }
  0x9b   : > { %1234 = vrot.lane.b32.xlu1 %v1233_v13, %s1312_s10  ;;  %v428_v38 = vmul.f32 %v420_v29, %v1421_v26  ;;  %v425_v49 = vmul.f32 %v420_v29, %v1417_v24 }
  0x9d   : > { %v568_v33 = vpop.permute.xlu1 %567  ;;  %v566_v34 = vpop.permute.xlu0 %565  ;;  %v1263_v44 = vpack.i.bf16 %v429_v37, %v428_v38  ;;  %v1258_v54 = vpack.i.bf16 %v426_v48, %v425_v49 }
  0x9e   : > { %1219 = vrot.lane.b32.xlu0 %v1218_v32, %s1311_s9  ;;  %v570_v39 = vsel %vm569_vm6, %v566_v34, %v568_v33  ;;  %v576_v42 = vmul.f32 %v568_v33, %v1419_v25  ;;  %v574_v50 = vmul.f32 %v566_v34, %v1429_v30  ;;  %v577_v51 = vmul.f32 %v566_v34, %v1431_v31 }
  0x9f   : > { %1244 = vrot.lane.b32.xlu1 %v1243_v28, %s1313_s11  ;;  %v575_v43 = vmul.f32 %v570_v39, %v1417_v24  ;;  %v424_v25 = vmul.f32 %v416_v19, %v1429_v30  ;;  %v579_v57 = vmul.f32 %v568_v33, %v1423_v27  ;;  %v578_v58 = vmul.f32 %v570_v39, %v1421_v26 }
  0xa0   : > { %v1283_v55 = vpack.i.bf16 %v577_v51, %v574_v50 }
  0xa1   : > { %v1273_v52 = vpack.i.bf16 %v576_v42, %v575_v43  ;;  %v1268_v59 = vpack.i.bf16 %v427_v56, %v424_v25  ;;  %v1278_v60 = vpack.i.bf16 %v579_v57, %v578_v58  ;;  %v1498_v62 = vpop.permute.xlu1 %1169  ;;  %v1502_v63 = vpop.permute.xlu0 %1174 }
  0xa2   : > { %1224 = vrot.lane.b32.xlu0 %v1223_v35, %s1313_s11  ;;  %v1172_v23 = vunpack.i.h.bf16 %v1498_v62  ;;  %v1171_v34 = vunpack.i.l.bf16 %v1498_v62  ;;  %v1177_v38 = vunpack.i.h.bf16 %v1502_v63  ;;  %v1176_v39 = vunpack.i.l.bf16 %v1502_v63 }
  0xa3   : > { %1249 = vrot.lane.b32.xlu1 %v1248_v36, %s1312_s10 }
  0xa4   : > { %v681_v25 = vsel %vm679_vm9, %v1171_v34, %v1172_v23  ;;  %v683_v56 = vsel %vm679_vm9, %v1176_v39, %v1177_v38 }
  0xa5   : > { %v1500_v27 = vpop.permute.xlu1 %1179 }
  0xa6   : > { %1239 = vrot.lane.b32.xlu0 %v1238_v47, %s1313_s11  ;;  %s370_s11 = scalar_lea.vmem %s1583_s7, %s1140_s26 }
  0xa7   : > { %1264 = vrot.lane.b32.xlu1 %v1263_v44, %s1314_s12 }
  0xaa   : > { %1254 = vrot.lane.b32.xlu0 %v1253_v53, %s1312_s10 }
  0xab   : > { %1274 = vrot.lane.b32.xlu1 %v1273_v52, %s1315_s13 }
  0xae   : > { %1259 = vrot.lane.b32.xlu0 %v1258_v54, %s1314_s12  ;;  %v1182_v54 = vunpack.i.h.bf16 %v1500_v27 }
  0xaf   : > { %1284 = vrot.lane.b32.xlu1 %v1283_v55, %s1315_s13  ;;  %v1181_v55 = vunpack.i.l.bf16 %v1500_v27 }
  0xb1   : > { %v680_v27 = vsel %vm679_vm9, %v1181_v55, %v1171_v34 }
  0xb2   : > { %1269 = vrot.lane.b32.xlu0 %v1268_v59, %s1314_s12  ;;  %s1117_s12 = sshll.u32 %s1586_s28, 2 }
  0xb3   : > { %s360_s15 = scalar_lea.vmem %s1580_s4, %s1117_s12 }
  0xb6   : > { %1279 = vrot.lane.b32.xlu0 %v1278_v60, %s1315_s13 }
  0xfc   : > { %v1185_v3 = vpop.permute.xlu0 %1184 }
  0xfd   : > { %v1190_v0 = vpop.permute.xlu1 %1189  ;;  %v1187_v12 = vunpack.i.h.bf16 %v1185_v3  ;;  %v1186_v13 = vunpack.i.l.bf16 %v1185_v3 }
  0xfe   : > { %v1191_v16 = vunpack.i.l.bf16 %v1190_v0  ;;  %v1192_v35 = vunpack.i.h.bf16 %v1190_v0  ;;  %v805_v0 = vpack.c.bf16 %v683_v56, %v681_v25 }
 0x101   : > { %v1205_v4 = vpop.permute.xlu1 %1204 }
 0x102   : > { %v1207_v8 = vunpack.i.h.bf16 %v1205_v4  ;;  %v1206_v9 = vunpack.i.l.bf16 %v1205_v4 }
 0x104   : > { %v1195_v6 = vpop.permute.xlu0 %1194  ;;  %v764_v20 = vsel %vm760_vm7, %v1206_v9, %v1207_v8  ;;  %v763_v22 = vsel %vm760_vm7, %v1187_v12, %v1206_v9 }
 0x105   : > { %v1210_v7 = vpop.permute.xlu1 %1209  ;;  %v1197_v50 = vunpack.i.h.bf16 %v1195_v6  ;;  %v1196_v51 = vunpack.i.l.bf16 %v1195_v6 }
 0x106   : > { %v1212_v17 = vunpack.i.h.bf16 %v1210_v7  ;;  %v1211_v18 = vunpack.i.l.bf16 %v1210_v7  ;;  %v682_v7 = vsel %vm679_vm9, %v1182_v54, %v1176_v39 }
 0x108   : > { %v1200_v10 = vpop.permute.xlu0 %1199  ;;  %v735_v40 = vsel %vm733_vm8, %v1211_v18, %v1212_v17  ;;  %v734_v41 = vsel %vm733_vm8, %v1191_v16, %v1211_v18  ;;  %v395_v18 = vsub.s32 0, %v1371_v1 }
 0x109   : > { %v1230_v11 = vpop.permute.xlu1 %1229  ;;  %v1202_v14 = vunpack.i.h.bf16 %v1200_v10  ;;  %v1201_v15 = vunpack.i.l.bf16 %v1200_v10 }
 0x10a   : > { %v1232_v42 = vunpack.i.h.bf16 %v1230_v11  ;;  %v1231_v43 = vunpack.i.l.bf16 %v1230_v11  ;;  %v400_v1 = vrot.slane %v1383_v5, %v395_v18 }
 0x10b   : > { %v762_v19 = vsel %vm760_vm7, %v1201_v15, %v1202_v14  ;;  %v761_v21 = vsel %vm760_vm7, %v1186_v13, %v1201_v15  ;;  %v804_v13 = vpack.c.bf16 %v682_v7, %v680_v27 }
 0x10c   : > { %v1215_v28 = vpop.permute.xlu0 %1214  ;;  %v811_v29 = vpack.c.bf16 %v764_v20, %v762_v19  ;;  %v810_v32 = vpack.c.bf16 %v763_v22, %v761_v21  ;;  %v710_v58 = vsel %vm706_vm10, %v1231_v43, %v1232_v42  ;;  %v709_v60 = vsel %vm706_vm10, %v1197_v50, %v1231_v43 }
 0x10d   : > { %v1505_v33 = vpop.permute.xlu1 %1234  ;;  %v1217_v36 = vunpack.i.h.bf16 %v1215_v28  ;;  %v1216_v37 = vunpack.i.l.bf16 %v1215_v28  ;;  %v402_v5 = vmul.f32 %v400_v1, %v1417_v24  ;;  %v404_v50 = vmul.f32 %v400_v1, %v1421_v26 }
 0x10e   : > { %826 = vmatprep.subr.bf16.mxu0 %v811_v29  ;;  %v1236_v14 = vunpack.i.l.bf16 %v1505_v33  ;;  %v1237_v23 = vunpack.i.h.bf16 %v1505_v33 }
 0x10f   : > { %827 = vmatpush1.bf16.msra.mxu0 %v810_v32  ;;  %v737_v44 = vsel %vm733_vm8, %v1216_v37, %v1217_v36  ;;  %v736_v45 = vsel %vm733_vm8, %v1192_v35, %v1216_v37  ;;  %v797_v24 = vpack.c.bf16 %v404_v50, %v402_v5 }
 0x110   : > { %v1220_v46 = vpop.permute.xlu0 %1219  ;;  %v809_v47 = vpack.c.bf16 %v737_v44, %v735_v40  ;;  %v808_v48 = vpack.c.bf16 %v736_v45, %v734_v41 }
 0x111   : > { %v1245_v49 = vpop.permute.xlu1 %1244  ;;  %v1222_v52 = vunpack.i.h.bf16 %v1220_v46  ;;  %v1221_v53 = vunpack.i.l.bf16 %v1220_v46 }
 0x112   : > { %828 = vmatprep.subr.bf16.mxu0 %v809_v47  ;;  %v1247_v3 = vunpack.i.h.bf16 %v1245_v49  ;;  %v1246_v4 = vunpack.i.l.bf16 %v1245_v49 }
 0x113   : > { %829 = vmatpush1.bf16.msra.mxu0 %v808_v48  ;;  %v708_v57 = vsel %vm706_vm10, %v1221_v53, %v1222_v52  ;;  %v707_v59 = vsel %vm706_vm10, %v1196_v51, %v1221_v53  ;;  %v396_v48 = vrot.slane %v1376_v2, %v395_v18 }
 0x114   : > { %v1225_v61 = vpop.permute.xlu0 %1224  ;;  %v807_v62 = vpack.c.bf16 %v710_v58, %v708_v57  ;;  %v806_v63 = vpack.c.bf16 %v709_v60, %v707_v59  ;;  %v656_v16 = vsel %vm652_vm11, %v1246_v4, %v1247_v3 }
 0x115   : > { %v1250_v6 = vpop.permute.xlu1 %1249  ;;  %v1227_v8 = vunpack.i.h.bf16 %v1225_v61  ;;  %v1226_v10 = vunpack.i.l.bf16 %v1225_v61  ;;  %v401_v57 = vmul.f32 %v396_v48, %v1429_v30  ;;  %v403_v2 = vmul.f32 %v396_v48, %v1431_v31 }
 0x116   : > { %830 = vmatprep.subr.bf16.mxu0 %v807_v62  ;;  %v1252_v15 = vunpack.i.h.bf16 %v1250_v6  ;;  %v1251_v19 = vunpack.i.l.bf16 %v1250_v6 }
 0x117   : > { %831 = vmatpush1.bf16.msra.mxu0 %v806_v63  ;;  %v655_v22 = vsel %vm652_vm11, %v1227_v8, %v1246_v4  ;;  %v796_v4 = vpack.c.bf16 %v403_v2, %v401_v57  ;;  %v1289_v8 = vld [vmem:[%s1494_s17] ss:$8 sps:$4 sm:$0xff]  }
 0x118   : > { %832 = vmatprep.subr.bf16.mxu0 %v805_v0  ;;  %v1240_v9 = vpop.permute.xlu0 %1239  ;;  %v627_v38 = vsel %vm625_vm12, %v1251_v19, %v1252_v15  ;;  %v626_v40 = vsel %vm625_vm12, %v1236_v14, %v1251_v19  ;;  %v390_v14 = vld [vmem:[%s1579_s3 + $0x8] sm:$0xff] }
 0x119   : > { %v1242_v11 = vunpack.i.h.bf16 %v1240_v9  ;;  %v1241_v12 = vunpack.i.l.bf16 %v1240_v9  ;;  %v1265_v17 = vpop.permute.xlu1 %1264  ;;  %v1316_v9 = vmov 0.0  }
 0x11a   : > { %v1267_v36 = vunpack.i.h.bf16 %v1265_v17  ;;  %v1266_v37 = vunpack.i.l.bf16 %v1265_v17  ;;  %963 = vmatprep.mubr.f32.mxu1 %v1316_v9  ;;  %v391_v17 = vld [vmem:[%s1579_s3 + $0x10] sm:$0xff] }
 0x11b   : > { %833 = vmatpush1.bf16.msra.mxu0 %v804_v13  ;;  %v654_v20 = vsel %vm652_vm11, %v1241_v12, %v1242_v11  ;;  %v653_v21 = vsel %vm652_vm11, %v1226_v10, %v1241_v12  ;;  %v890_v10 = vld [vmem:[%s1581_s5] sm:$0x7]  ;;  %v1317_v11 = vmov 0  }
 0x11c   : > { %v1255_v28 = vpop.permute.xlu0 %1254  ;;  %v803_v29 = vpack.c.bf16 %v656_v16, %v654_v20  ;;  %v802_v32 = vpack.c.bf16 %v655_v22, %v653_v21  ;;  %v602_v47 = vsel %vm598_vm13, %v1266_v37, %v1267_v36  ;;  %1288 = vset.pattern.permute.xlu0 %v1317_v11  ;;  %v389_v12 = vld [vmem:[%s1579_s3] sm:$0xff]  ;;  %v392_v21 = vld [vmem:[%s1579_s3 + $0x18] sm:$0xff] }
 0x11d   : > { %v1257_v34 = vunpack.i.h.bf16 %v1255_v28  ;;  %v1256_v35 = vunpack.i.l.bf16 %v1255_v28  ;;  %v1275_v33 = vpop.permute.xlu1 %1274  ;;  %893 = vperm.xlu0 %1288, %v890_v10  }
 0x11e   : > { %834 = vmatprep.subr.bf16.mxu0 %v803_v29  ;;  %v1277_v51 = vunpack.i.h.bf16 %v1275_v33  ;;  %v1276_v52 = vunpack.i.l.bf16 %v1275_v33 }
 0x11f   : > { %835 = vmatpush1.bf16.msra.mxu0 %v802_v32  ;;  %v629_v39 = vsel %vm625_vm12, %v1256_v35, %v1257_v34  ;;  %v628_v41 = vsel %vm625_vm12, %v1237_v23, %v1256_v35 }
 0x120   : > { %v1260_v42 = vpop.permute.xlu0 %1259  ;;  %v801_v43 = vpack.c.bf16 %v629_v39, %v627_v38  ;;  %v800_v44 = vpack.c.bf16 %v628_v41, %v626_v40  ;;  %v789_v61 = vsel %vm787_vm14, %v1276_v52, %v1277_v51 }
 0x121   : > { %v1262_v45 = vunpack.i.h.bf16 %v1260_v42  ;;  %v1261_v46 = vunpack.i.l.bf16 %v1260_v42  ;;  %v1285_v56 = vpop.permute.xlu1 %1284  ;;  %v889_v42 = vld [vmem:[%s360_s15] sm:$0x7] }
 0x122   : > { %836 = vmatprep.subr.bf16.mxu0 %v801_v43  ;;  %v1287_v62 = vunpack.i.h.bf16 %v1285_v56  ;;  %v1286_v63 = vunpack.i.l.bf16 %v1285_v56 }
 0x123   : > { %837 = vmatpush1.bf16.msra.mxu0 %v800_v44  ;;  %v600_v49 = vsel %vm598_vm13, %v1261_v46, %v1262_v45  ;;  %v974_v44 = vld [vmem:[%s365_s19] sm:$0x77] }
 0x124   : > { %v1270_v53 = vpop.permute.xlu0 %1269  ;;  %v799_v54 = vpack.c.bf16 %v602_v47, %v600_v49  ;;  %v788_v6 = vsel %vm787_vm14, %v1286_v63, %v1276_v52  ;;  %v976_v49 = vcombine.high %v974_v44, %v974_v44 }
 0x125   : > { %v1272_v55 = vunpack.i.h.bf16 %v1270_v53  ;;  %v1271_v25 = vunpack.i.l.bf16 %v1270_v53 }
 0x126   : > { %838 = vmatprep.subr.bf16.mxu0 %v799_v54 }
 0x127   : > { %v599_v58 = vsel %vm598_vm13, %v1271_v25, %v1261_v46  ;;  %v601_v59 = vsel %vm598_vm13, %v1272_v55, %v1266_v37 }
 0x128   : > { %v1280_v60 = vpop.permute.xlu0 %1279  ;;  %v798_v26 = vpack.c.bf16 %v601_v59, %v599_v58 }
 0x129   : > { %v1282_v0 = vunpack.i.h.bf16 %v1280_v60  ;;  %v1281_v3 = vunpack.i.l.bf16 %v1280_v60 }
 0x12a   : > { %839 = vmatpush1.bf16.msra.mxu0 %v798_v26 }
 0x12b   : > { %840 = vmatprep.subr.bf16.mxu0 %v797_v24  ;;  %v791_v30 = vsel %vm787_vm14, %v1281_v3, %v1282_v0  ;;  %v790_v27 = vsel %vm787_vm14, %v1287_v62, %v1281_v3 }
 0x12c   : > { %v813_v31 = vpack.c.bf16 %v791_v30, %v789_v61  ;;  %v812_v7 = vpack.c.bf16 %v790_v27, %v788_v6 }
 0x12e   : > { %841 = vmatpush1.bf16.msra.mxu0 %v796_v4 }
 0x12f   : > { %856 = vmatprep.subr.bf16.mxu0 %v813_v31 }
 0x132   : > { %857 = vmatpush2.bf16.msra.mxu0 %v812_v7 }
 0x135   : > { %859 = vmatmul.mubr.bf16.vlgmr.msra.gmra.mxu0 %v1289_v8 }
 0x198   : > { %v894_v43 = vpop.permute.xlu0 %893 }
 0x1f5   : > { %v860_v13 = vpop.f32.mrf.mxu0 }
 0x1f6   : > { %v861_v15 = vadd.f32 %v860_v13, %v389_v12 }
 0x1f7   : > { %v862_v16 = vpop.f32.mrf.mxu0 }
 0x1f8   : > { %v869_v18 = vmul.f32 0.2, %v861_v15  ;;  %v863_v19 = vadd.f32 %v862_v16, %v390_v14 }
 0x1f9   : > { %v864_v20 = vpop.f32.mrf.mxu0 }
 0x1fa   : > { %v873_v22 = vmax.f32 %v861_v15, %v869_v18  ;;  %v870_v23 = vmul.f32 0.2, %v863_v19  ;;  %v865_v28 = vadd.f32 %v864_v20, %v391_v17 }
 0x1fb   : > { %v866_v29 = vpop.f32.mrf.mxu0 }
 0x1fc   : > { %v1129_v32 = vclamps-f32 %v873_v22, 256.0  ;;  %v874_v34 = vmax.f32 %v863_v19, %v870_v23  ;;  %v871_v35 = vmul.f32 0.2, %v865_v28  ;;  %v867_v36 = vadd.f32 %v866_v29, %v392_v21 }
 0x1fe   : > { %885 = vst [vmem:[%s370_s11] sm:$0xff] %v1129_v32  ;;  %v1130_v37 = vclamps-f32 %v874_v34, 256.0  ;;  %v872_v1 = vmul.f32 0.2, %v867_v36  ;;  %v875_v38 = vmax.f32 %v865_v28, %v871_v35 }
 0x200   : > { %886 = vst [vmem:[%s370_s11 + $0x8] sm:$0xff] %v1130_v37  ;;  %v876_v39 = vmax.f32 %v867_v36, %v872_v1  ;;  %v1131_v40 = vclamps-f32 %v875_v38, 256.0 }
 0x202   : > { %v1132_v41 = vclamps-f32 %v876_v39, 256.0  ;;  %887 = vst [vmem:[%s370_s11 + $0x10] sm:$0xff] %v1131_v40 }
 0x204   : > { %888 = vst [vmem:[%s370_s11 + $0x18] sm:$0xff] %v1132_v41  ;;  %927 = vmatprep.subr.mxu1 %v1132_v41 }
 0x205   : > { %928 = vmatpush1.msra.mxu1 %v1131_v40 }
 0x206   : > { %929 = vmatprep.subr.mxu1 %v1130_v37 }
 0x207   : > { %930 = vmatpush1.msra.mxu1 %v1129_v32 }
 0x208   : > { %1133 = vmatmul.mubr.msk.f32.vlgmr.msra.gmra.mxu1 %vm469_vm3, %v889_v42 }
 0x2c8   : > { %v965_v33 = vpop.f32.mrf.mxu1 }
 0x2c9   : > { %v966_v45 = vadd.f32 %v965_v33, %v894_v43 }
 0x2ca   : > { %v967_v46 = vpop.f32.mrf.mxu1 }
 0x2cb   : > { %v1134_v47 = vclamps-f32 %v966_v45, 256.0  ;;  %v968_v48 = vadd.f32 %v967_v46, %v894_v43 }
 0x2cd   : > { %v1135_v5 = vclamps-f32 %v968_v48, 256.0  ;;  %v978_v50 = vadd.f32 %v1134_v47, %v974_v44 }
 0x2cf   : > { %v979_v51 = vadd.f32 %v1135_v5, %v976_v49 }
 0x2d1   : > { %v982_v52 = vcombine.low %v978_v50, %v979_v51 }
 0x2d3   : > { %984 = vst [vmem:[%s375_s22] sm:$0x77] %v982_v52 }
 0x2d4 PF: > { %s19_s27 = sadd.s32 1, %s1299_s27  }
 0x2d5   : > { %p16_p4 = scmp.ge.s32.totalorder %s19_s27, 4  }
 0x2d7   :  { %18 = sbr.rel (!%p16_p4) target bundleno = 1 (0x1), region = 99 }

</bundles_post_ra>
